<compile_context>
chip_gen: v5e
topology: v5e:2x2
jax: 0.10.0
libtpu: 0.0.40
codegen_flags: <defaults>
</compile_context>

<pallas_src>
import jax
import jax.numpy as jnp
from jax.experimental import pallas as pl
from jax.experimental.pallas import tpu as pltpu


def gaussian_membership_kernel(x_ref, a_ref, b_ref, o_ref):
    # x_ref: (tn, D), a_ref/b_ref: (R, D), o_ref: (tn, R*D)  (lane-dense)
    R, D = a_ref.shape
    x = x_ref[...]                                      # (tn, D)
    # Static (unrolled) loop over rules; everything stays 2-D / lane friendly.
    # a/b are resident across grid steps (constant index_map); only this small
    # O(R*D) arithmetic repeats per step, which is negligible for modest R.
    for r in range(R):
        a_r = a_ref[r:r + 1, :]                         # (1, D)
        b_r = jnp.maximum(b_ref[r:r + 1, :], 1e-8)      # clamp(b, min=1e-8)
        c_r = -1.0 / (2.0 * b_r * b_r)                  # R*D divides total, not N*R*D
        d = x - a_r                                     # (tn, D)
        o_ref[:, r * D:(r + 1) * D] = jnp.exp((d * d) * c_r).astype(o_ref.dtype)


def _pick_batch_tile(N, R, D, vmem_budget_bytes):
    """Largest batch tile whose double-buffered f32 blocks fit the VMEM budget."""
    bytes_per_row = 2 * 4 * D * (R + 1)                 # 2x (x block + out block) per row
    tn = min(1024, max(8, vmem_budget_bytes // bytes_per_row))
    tn = (tn // 8) * 8                                  # sublane multiple
    if N >= 16:
        # Keep at least 2 grid steps so both v7x TensorCores get work.
        tn = min(tn, max(8, ((N // 2) // 8) * 8))
    else:
        tn = 8
    return tn


def gaussian_membership(x, a, b, *, tn=None, out_dtype=None,
                        vmem_budget_bytes=12 * 1024 * 1024):
    """x: (N, D); a, b: (R, D) -> (N, R, D) = exp(-(x-a)^2 / (2*clamp(b,1e-8)^2))."""
    N, D = x.shape
    R, Da = a.shape
    assert Da == D and b.shape == (R, D)
    out_dtype = x.dtype if out_dtype is None else jnp.dtype(out_dtype)
    out_itemsize = jnp.dtype(out_dtype).itemsize

    if tn is None:
        tn = _pick_batch_tile(N, R, D, vmem_budget_bytes)
    grid = (N + tn - 1) // tn
    n_pad = grid * tn
    if n_pad != N:
        x = jnp.pad(x, ((0, n_pad - N), (0, 0)))

    # TODO(synk): for very large num_rules, add a second ("parallel") grid axis over R.
    out_flat = pl.pallas_call(
        gaussian_membership_kernel,
        out_shape=jax.ShapeDtypeStruct((n_pad, R * D), out_dtype),
        grid_spec=pltpu.PrefetchScalarGridSpec(
            num_scalar_prefetch=0,
            grid=(grid,),
            in_specs=[
                pl.BlockSpec((tn, D), lambda i: (i, 0)),   # X tile over batch
                pl.BlockSpec((R, D), lambda i: (0, 0)),    # a (whole param, resident)
                pl.BlockSpec((R, D), lambda i: (0, 0)),    # b (whole param, resident)
            ],
            out_specs=pl.BlockSpec((tn, R * D), lambda i: (i, 0)),  # lane-dense store
        ),
        compiler_params=pltpu.CompilerParams(
            dimension_semantics=("parallel",),
            vmem_limit_bytes=32 * 1024 * 1024,
        ),
        cost_estimate=pl.CostEstimate(
            flops=3 * n_pad * R * D,
            transcendentals=n_pad * R * D,
            bytes_accessed=4 * (n_pad * D + 2 * R * D) + n_pad * R * D * out_itemsize,
        ),
    )(x, a, b)

    return out_flat[:N].reshape(N, R, D)


def gaussian_membership_ref(x, a, b):
    bc = jnp.maximum(b, 1e-8)
    diff = x[:, None, :] - a[None, :, :]
    return jnp.exp(-(diff ** 2) / (2.0 * bc ** 2))


if __name__ == "__main__":
    # Small shapes consistent with the module: N (batch) = 256,
    # input_dim = 128 (lane-aligned), num_rules = 8.
    N, D, R = 256, 128, 8

    key = jax.random.PRNGKey(0)
    kx, ka, kb = jax.random.split(key, 3)

    x = jax.random.normal(kx, (N, D), dtype=jnp.float32)
    # Deterministic param init mirroring nn.Parameter(torch.randn(...)) /
    # torch.abs(torch.randn(...)) — synthetic, no checkpoint load.
    a = jax.random.normal(ka, (R, D), dtype=jnp.float32)
    b = jnp.abs(jax.random.normal(kb, (R, D), dtype=jnp.float32))

    out = gaussian_membership(x, a, b)
    out = jax.block_until_ready(out)

    ref = gaussian_membership_ref(x, a, b)
    assert out.shape == (N, R, D)
    assert jnp.allclose(out, ref, atol=2e-6, rtol=2e-6), "mismatch vs reference"

    print("KERNEL_OK")
</pallas_src>

<mosaic_0001>
module attributes {stable_mosaic.version = 11 : i64} {
  func.func @gaussian_membership_kernel(%arg0: i32, %arg1: memref<128x128xf32, #tpu.memory_space<vmem>>, %arg2: memref<8x128xf32, #tpu.memory_space<vmem>>, %arg3: memref<8x128xf32, #tpu.memory_space<vmem>>, %arg4: memref<128x1024xf32, #tpu.memory_space<vmem>>) attributes {dimension_semantics = [#tpu.dimension_semantics<parallel>], iteration_bounds = array<i64: 2>, scalar_prefetch = 0 : i64, scratch_operands = 0 : i64, tpu.core_type = #tpu.core_type<tc>, window_params = [{transform_indices = @transform_0, window_bounds = array<i64: 128, 128>}, {pipeline_mode = #tpu.pipeline_mode<synchronous>, transform_indices = @transform_1, window_bounds = array<i64: 8, 128>}, {pipeline_mode = #tpu.pipeline_mode<synchronous>, transform_indices = @transform_2, window_bounds = array<i64: 8, 128>}, {transform_indices = @transform_3, window_bounds = array<i64: 128, 1024>}]} {
    %c0 = arith.constant 0 : index
    %c0_0 = arith.constant 0 : index
    %0 = vector.load %arg1[%c0, %c0_0] : memref<128x128xf32, #tpu.memory_space<vmem>>, vector<128x128xf32>
    %c0_1 = arith.constant 0 : index
    %c0_2 = arith.constant 0 : index
    %1 = vector.load %arg2[%c0_1, %c0_2] : memref<8x128xf32, #tpu.memory_space<vmem>>, vector<1x128xf32>
    %c0_3 = arith.constant 0 : index
    %c0_4 = arith.constant 0 : index
    %2 = vector.load %arg3[%c0_3, %c0_4] : memref<8x128xf32, #tpu.memory_space<vmem>>, vector<1x128xf32>
    %cst = arith.constant 9.99999993E-9 : f32
    %3 = vector.broadcast %cst : f32 to vector<1x128xf32>
    %4 = arith.maximumf %2, %3 : vector<1x128xf32>
    %cst_5 = arith.constant 2.000000e+00 : f32
    %5 = vector.broadcast %cst_5 : f32 to vector<1x128xf32>
    %6 = arith.mulf %5, %4 : vector<1x128xf32>
    %7 = arith.mulf %6, %4 : vector<1x128xf32>
    %cst_6 = arith.constant -1.000000e+00 : f32
    %8 = vector.broadcast %cst_6 : f32 to vector<1x128xf32>
    %9 = arith.divf %8, %7 : vector<1x128xf32>
    %10 = vector.broadcast %1 : vector<1x128xf32> to vector<128x128xf32>
    %11 = arith.subf %0, %10 : vector<128x128xf32>
    %12 = arith.mulf %11, %11 : vector<128x128xf32>
    %13 = vector.broadcast %9 : vector<1x128xf32> to vector<128x128xf32>
    %14 = arith.mulf %12, %13 : vector<128x128xf32>
    %15 = math.exp %14 : vector<128x128xf32>
    %c0_7 = arith.constant 0 : index
    %c0_8 = arith.constant 0 : index
    %16 = vector.load %arg4[%c0_7, %c0_8] : memref<128x1024xf32, #tpu.memory_space<vmem>>, vector<128x128xf32>
    tpu.vector_store %arg4[%c0_7, %c0_8], %15 {strides = array<i32>} : memref<128x1024xf32, #tpu.memory_space<vmem>>, vector<128x128xf32>,
    %c1 = arith.constant 1 : index
    %c0_9 = arith.constant 0 : index
    %17 = vector.load %arg2[%c1, %c0_9] : memref<8x128xf32, #tpu.memory_space<vmem>>, vector<1x128xf32>
    %c1_10 = arith.constant 1 : index
    %c0_11 = arith.constant 0 : index
    %18 = vector.load %arg3[%c1_10, %c0_11] : memref<8x128xf32, #tpu.memory_space<vmem>>, vector<1x128xf32>
    %cst_12 = arith.constant 9.99999993E-9 : f32
    %19 = vector.broadcast %cst_12 : f32 to vector<1x128xf32>
    %20 = arith.maximumf %18, %19 : vector<1x128xf32>
    %cst_13 = arith.constant 2.000000e+00 : f32
    %21 = vector.broadcast %cst_13 : f32 to vector<1x128xf32>
    %22 = arith.mulf %21, %20 : vector<1x128xf32>
    %23 = arith.mulf %22, %20 : vector<1x128xf32>
    %cst_14 = arith.constant -1.000000e+00 : f32
    %24 = vector.broadcast %cst_14 : f32 to vector<1x128xf32>
    %25 = arith.divf %24, %23 : vector<1x128xf32>
    %26 = vector.broadcast %17 : vector<1x128xf32> to vector<128x128xf32>
    %27 = arith.subf %0, %26 : vector<128x128xf32>
    %28 = arith.mulf %27, %27 : vector<128x128xf32>
    %29 = vector.broadcast %25 : vector<1x128xf32> to vector<128x128xf32>
    %30 = arith.mulf %28, %29 : vector<128x128xf32>
    %31 = math.exp %30 : vector<128x128xf32>
    %c0_15 = arith.constant 0 : index
    %c128 = arith.constant 128 : index
    %32 = vector.load %arg4[%c0_15, %c128] : memref<128x1024xf32, #tpu.memory_space<vmem>>, vector<128x128xf32>
    tpu.vector_store %arg4[%c0_15, %c128], %31 {strides = array<i32>} : memref<128x1024xf32, #tpu.memory_space<vmem>>, vector<128x128xf32>,
    %c2 = arith.constant 2 : index
    %c0_16 = arith.constant 0 : index
    %33 = vector.load %arg2[%c2, %c0_16] : memref<8x128xf32, #tpu.memory_space<vmem>>, vector<1x128xf32>
    %c2_17 = arith.constant 2 : index
    %c0_18 = arith.constant 0 : index
    %34 = vector.load %arg3[%c2_17, %c0_18] : memref<8x128xf32, #tpu.memory_space<vmem>>, vector<1x128xf32>
    %cst_19 = arith.constant 9.99999993E-9 : f32
    %35 = vector.broadcast %cst_19 : f32 to vector<1x128xf32>
    %36 = arith.maximumf %34, %35 : vector<1x128xf32>
    %cst_20 = arith.constant 2.000000e+00 : f32
    %37 = vector.broadcast %cst_20 : f32 to vector<1x128xf32>
    %38 = arith.mulf %37, %36 : vector<1x128xf32>
    %39 = arith.mulf %38, %36 : vector<1x128xf32>
    %cst_21 = arith.constant -1.000000e+00 : f32
    %40 = vector.broadcast %cst_21 : f32 to vector<1x128xf32>
    %41 = arith.divf %40, %39 : vector<1x128xf32>
    %42 = vector.broadcast %33 : vector<1x128xf32> to vector<128x128xf32>
    %43 = arith.subf %0, %42 : vector<128x128xf32>
    %44 = arith.mulf %43, %43 : vector<128x128xf32>
    %45 = vector.broadcast %41 : vector<1x128xf32> to vector<128x128xf32>
    %46 = arith.mulf %44, %45 : vector<128x128xf32>
    %47 = math.exp %46 : vector<128x128xf32>
    %c0_22 = arith.constant 0 : index
    %c256 = arith.constant 256 : index
    %48 = vector.load %arg4[%c0_22, %c256] : memref<128x1024xf32, #tpu.memory_space<vmem>>, vector<128x128xf32>
    tpu.vector_store %arg4[%c0_22, %c256], %47 {strides = array<i32>} : memref<128x1024xf32, #tpu.memory_space<vmem>>, vector<128x128xf32>,
    %c3 = arith.constant 3 : index
    %c0_23 = arith.constant 0 : index
    %49 = vector.load %arg2[%c3, %c0_23] : memref<8x128xf32, #tpu.memory_space<vmem>>, vector<1x128xf32>
    %c3_24 = arith.constant 3 : index
    %c0_25 = arith.constant 0 : index
    %50 = vector.load %arg3[%c3_24, %c0_25] : memref<8x128xf32, #tpu.memory_space<vmem>>, vector<1x128xf32>
    %cst_26 = arith.constant 9.99999993E-9 : f32
    %51 = vector.broadcast %cst_26 : f32 to vector<1x128xf32>
    %52 = arith.maximumf %50, %51 : vector<1x128xf32>
    %cst_27 = arith.constant 2.000000e+00 : f32
    %53 = vector.broadcast %cst_27 : f32 to vector<1x128xf32>
    %54 = arith.mulf %53, %52 : vector<1x128xf32>
    %55 = arith.mulf %54, %52 : vector<1x128xf32>
    %cst_28 = arith.constant -1.000000e+00 : f32
    %56 = vector.broadcast %cst_28 : f32 to vector<1x128xf32>
    %57 = arith.divf %56, %55 : vector<1x128xf32>
    %58 = vector.broadcast %49 : vector<1x128xf32> to vector<128x128xf32>
    %59 = arith.subf %0, %58 : vector<128x128xf32>
    %60 = arith.mulf %59, %59 : vector<128x128xf32>
    %61 = vector.broadcast %57 : vector<1x128xf32> to vector<128x128xf32>
    %62 = arith.mulf %60, %61 : vector<128x128xf32>
    %63 = math.exp %62 : vector<128x128xf32>
    %c0_29 = arith.constant 0 : index
    %c384 = arith.constant 384 : index
    %64 = vector.load %arg4[%c0_29, %c384] : memref<128x1024xf32, #tpu.memory_space<vmem>>, vector<128x128xf32>
    tpu.vector_store %arg4[%c0_29, %c384], %63 {strides = array<i32>} : memref<128x1024xf32, #tpu.memory_space<vmem>>, vector<128x128xf32>,
    %c4 = arith.constant 4 : index
    %c0_30 = arith.constant 0 : index
    %65 = vector.load %arg2[%c4, %c0_30] : memref<8x128xf32, #tpu.memory_space<vmem>>, vector<1x128xf32>
    %c4_31 = arith.constant 4 : index
    %c0_32 = arith.constant 0 : index
    %66 = vector.load %arg3[%c4_31, %c0_32] : memref<8x128xf32, #tpu.memory_space<vmem>>, vector<1x128xf32>
    %cst_33 = arith.constant 9.99999993E-9 : f32
    %67 = vector.broadcast %cst_33 : f32 to vector<1x128xf32>
    %68 = arith.maximumf %66, %67 : vector<1x128xf32>
    %cst_34 = arith.constant 2.000000e+00 : f32
    %69 = vector.broadcast %cst_34 : f32 to vector<1x128xf32>
    %70 = arith.mulf %69, %68 : vector<1x128xf32>
    %71 = arith.mulf %70, %68 : vector<1x128xf32>
    %cst_35 = arith.constant -1.000000e+00 : f32
    %72 = vector.broadcast %cst_35 : f32 to vector<1x128xf32>
    %73 = arith.divf %72, %71 : vector<1x128xf32>
    %74 = vector.broadcast %65 : vector<1x128xf32> to vector<128x128xf32>
    %75 = arith.subf %0, %74 : vector<128x128xf32>
    %76 = arith.mulf %75, %75 : vector<128x128xf32>
    %77 = vector.broadcast %73 : vector<1x128xf32> to vector<128x128xf32>
    %78 = arith.mulf %76, %77 : vector<128x128xf32>
    %79 = math.exp %78 : vector<128x128xf32>
    %c0_36 = arith.constant 0 : index
    %c512 = arith.constant 512 : index
    %80 = vector.load %arg4[%c0_36, %c512] : memref<128x1024xf32, #tpu.memory_space<vmem>>, vector<128x128xf32>
    tpu.vector_store %arg4[%c0_36, %c512], %79 {strides = array<i32>} : memref<128x1024xf32, #tpu.memory_space<vmem>>, vector<128x128xf32>,
    %c5 = arith.constant 5 : index
    %c0_37 = arith.constant 0 : index
    %81 = vector.load %arg2[%c5, %c0_37] : memref<8x128xf32, #tpu.memory_space<vmem>>, vector<1x128xf32>
    %c5_38 = arith.constant 5 : index
    %c0_39 = arith.constant 0 : index
    %82 = vector.load %arg3[%c5_38, %c0_39] : memref<8x128xf32, #tpu.memory_space<vmem>>, vector<1x128xf32>
    %cst_40 = arith.constant 9.99999993E-9 : f32
    %83 = vector.broadcast %cst_40 : f32 to vector<1x128xf32>
    %84 = arith.maximumf %82, %83 : vector<1x128xf32>
    %cst_41 = arith.constant 2.000000e+00 : f32
    %85 = vector.broadcast %cst_41 : f32 to vector<1x128xf32>
    %86 = arith.mulf %85, %84 : vector<1x128xf32>
    %87 = arith.mulf %86, %84 : vector<1x128xf32>
    %cst_42 = arith.constant -1.000000e+00 : f32
    %88 = vector.broadcast %cst_42 : f32 to vector<1x128xf32>
    %89 = arith.divf %88, %87 : vector<1x128xf32>
    %90 = vector.broadcast %81 : vector<1x128xf32> to vector<128x128xf32>
    %91 = arith.subf %0, %90 : vector<128x128xf32>
    %92 = arith.mulf %91, %91 : vector<128x128xf32>
    %93 = vector.broadcast %89 : vector<1x128xf32> to vector<128x128xf32>
    %94 = arith.mulf %92, %93 : vector<128x128xf32>
    %95 = math.exp %94 : vector<128x128xf32>
    %c0_43 = arith.constant 0 : index
    %c640 = arith.constant 640 : index
    %96 = vector.load %arg4[%c0_43, %c640] : memref<128x1024xf32, #tpu.memory_space<vmem>>, vector<128x128xf32>
    tpu.vector_store %arg4[%c0_43, %c640], %95 {strides = array<i32>} : memref<128x1024xf32, #tpu.memory_space<vmem>>, vector<128x128xf32>,
    %c6 = arith.constant 6 : index
    %c0_44 = arith.constant 0 : index
    %97 = vector.load %arg2[%c6, %c0_44] : memref<8x128xf32, #tpu.memory_space<vmem>>, vector<1x128xf32>
    %c6_45 = arith.constant 6 : index
    %c0_46 = arith.constant 0 : index
    %98 = vector.load %arg3[%c6_45, %c0_46] : memref<8x128xf32, #tpu.memory_space<vmem>>, vector<1x128xf32>
    %cst_47 = arith.constant 9.99999993E-9 : f32
    %99 = vector.broadcast %cst_47 : f32 to vector<1x128xf32>
    %100 = arith.maximumf %98, %99 : vector<1x128xf32>
    %cst_48 = arith.constant 2.000000e+00 : f32
    %101 = vector.broadcast %cst_48 : f32 to vector<1x128xf32>
    %102 = arith.mulf %101, %100 : vector<1x128xf32>
    %103 = arith.mulf %102, %100 : vector<1x128xf32>
    %cst_49 = arith.constant -1.000000e+00 : f32
    %104 = vector.broadcast %cst_49 : f32 to vector<1x128xf32>
    %105 = arith.divf %104, %103 : vector<1x128xf32>
    %106 = vector.broadcast %97 : vector<1x128xf32> to vector<128x128xf32>
    %107 = arith.subf %0, %106 : vector<128x128xf32>
    %108 = arith.mulf %107, %107 : vector<128x128xf32>
    %109 = vector.broadcast %105 : vector<1x128xf32> to vector<128x128xf32>
    %110 = arith.mulf %108, %109 : vector<128x128xf32>
    %111 = math.exp %110 : vector<128x128xf32>
    %c0_50 = arith.constant 0 : index
    %c768 = arith.constant 768 : index
    %112 = vector.load %arg4[%c0_50, %c768] : memref<128x1024xf32, #tpu.memory_space<vmem>>, vector<128x128xf32>
    tpu.vector_store %arg4[%c0_50, %c768], %111 {strides = array<i32>} : memref<128x1024xf32, #tpu.memory_space<vmem>>, vector<128x128xf32>,
    %c7 = arith.constant 7 : index
    %c0_51 = arith.constant 0 : index
    %113 = vector.load %arg2[%c7, %c0_51] : memref<8x128xf32, #tpu.memory_space<vmem>>, vector<1x128xf32>
    %c7_52 = arith.constant 7 : index
    %c0_53 = arith.constant 0 : index
    %114 = vector.load %arg3[%c7_52, %c0_53] : memref<8x128xf32, #tpu.memory_space<vmem>>, vector<1x128xf32>
    %cst_54 = arith.constant 9.99999993E-9 : f32
    %115 = vector.broadcast %cst_54 : f32 to vector<1x128xf32>
    %116 = arith.maximumf %114, %115 : vector<1x128xf32>
    %cst_55 = arith.constant 2.000000e+00 : f32
    %117 = vector.broadcast %cst_55 : f32 to vector<1x128xf32>
    %118 = arith.mulf %117, %116 : vector<1x128xf32>
    %119 = arith.mulf %118, %116 : vector<1x128xf32>
    %cst_56 = arith.constant -1.000000e+00 : f32
    %120 = vector.broadcast %cst_56 : f32 to vector<1x128xf32>
    %121 = arith.divf %120, %119 : vector<1x128xf32>
    %122 = vector.broadcast %113 : vector<1x128xf32> to vector<128x128xf32>
    %123 = arith.subf %0, %122 : vector<128x128xf32>
    %124 = arith.mulf %123, %123 : vector<128x128xf32>
    %125 = vector.broadcast %121 : vector<1x128xf32> to vector<128x128xf32>
    %126 = arith.mulf %124, %125 : vector<128x128xf32>
    %127 = math.exp %126 : vector<128x128xf32>
    %c0_57 = arith.constant 0 : index
    %c896 = arith.constant 896 : index
    %128 = vector.load %arg4[%c0_57, %c896] : memref<128x1024xf32, #tpu.memory_space<vmem>>, vector<128x128xf32>
    tpu.vector_store %arg4[%c0_57, %c896], %127 {strides = array<i32>} : memref<128x1024xf32, #tpu.memory_space<vmem>>, vector<128x128xf32>,
    return
  }
  func.func @transform_0(%arg0: i32) -> (i32, i32) {
    %c0_i32 = arith.constant 0 : i32
    %c0_i32_0 = arith.constant 0 : i32
    return %arg0, %c0_i32 : i32, i32
  }
  func.func @transform_1(%arg0: i32) -> (i32, i32) {
    %c0_i32 = arith.constant 0 : i32
    %c0_i32_0 = arith.constant 0 : i32
    %c0_i32_1 = arith.constant 0 : i32
    return %c0_i32, %c0_i32_0 : i32, i32
  }
  func.func @transform_2(%arg0: i32) -> (i32, i32) {
    %c0_i32 = arith.constant 0 : i32
    %c0_i32_0 = arith.constant 0 : i32
    %c0_i32_1 = arith.constant 0 : i32
    return %c0_i32, %c0_i32_0 : i32, i32
  }
  func.func @transform_3(%arg0: i32) -> (i32, i32) {
    %c0_i32 = arith.constant 0 : i32
    %c0_i32_0 = arith.constant 0 : i32
    return %arg0, %c0_i32 : i32, i32
  }
}

</mosaic_0001>

<bundles_post_ra>
// kernel: tpu_custom_call.1
= control target key start
LH: loop header
LB: loop body
LE: loop exit
PB: predicated region body
PF: predicated region fallthrough
CT: control target
= control target key end

     0   :  { %8 = vsyncpa [#allocation3], 0  ;;  %s3066_s0 = inlined_call_operand.hbm [shape: f32[256,128], index: 0, kind: input, shape index: {}]   ;;  %s3067_s1 = inlined_call_operand.hbm [shape: f32[8,128], index: 1, kind: input, shape index: {}]   ;;  %s3068_s2 = inlined_call_operand.hbm [shape: f32[8,128], index: 2, kind: input, shape index: {}]   ;;  %s3069_s3 = inlined_call_operand.hbm [shape: f32[256,1024], index: 3, kind: output, shape index: {}]  }
   0x1   :  { %10 = vsyncpa [#allocation3 + $0x1], 0 }
   0x2   :  { %11 = vsyncpa [#allocation6], 0 }
   0x3   :  { %12 = vsyncpa [#allocation4], 0 }
   0x4   :  { %14 = vsyncpa [#allocation4 + $0x1], 0  ;;  %s1868_s12 = smov 0   ;;  %s1870_s13 = smov 0  }
   0x5   :  { %s1872_s14 = smov 0   ;;  %s1874_s15 = smov 0  }
   0x6 LB: > { %s1889_s16 = sadd.s32 4294967295, %s1840_s15   ;;  %s1291_s17 = sadd.s32 4294967294, %s1840_s15   ;;  %s1840_s15 = sphi %s1874_s15, %s3128_s15   ;;  %s1836_s14 = sphi %s1872_s14, %s3127_s14   ;;  %s1832_s13 = sphi %s1870_s13, %s3126_s13   ;;  %s1828_s12 = sphi %s1868_s12, %s3125_s12  }
   0x7   : > { %s1893_s18 = sadd.s32 1, %s1840_s15   ;;  %s27_s19 = sadd.s32 1, %s1836_s14 }
   0x8   : > { %s24_s20 = ssub.s32 %s1840_s15, %s1893_s18  ;;  %p34_p0 = scmp.ne.s32.totalorder %s1836_s14, %s1832_s13 }
   0x9   : > { %p25_p1 = scmp.eq.s32.totalorder %s24_s20, 0  ;;  %p35_p2 = scmp.eq.s32.totalorder %s1840_s15, 0 }
   0xa   : > { %p40_p3 = scmp.ne.s32.totalorder %s1832_s13, %s1828_s12  ;;  %p41_p4 = scmp.eq.s32.totalorder %s1889_s16, 0 }
   0xb   : > { %s1905_s21 = scalar_select %p25_p1, %s1836_s14, %s27_s19  }
   0xc   : > { %p1907_p5 = por %p35_p2, %p34_p0  ;;  %p1913_p6 = por %p41_p4, %p40_p3 }
   0xd   : > { %p106_p7 = scmp.eq.s32.totalorder %s1889_s16, 1  ;;  %p112_p8 = scmp.eq.s32.totalorder %s1291_s17, 1 }
   0xe   : > { %p1292_p9 = scmp.ge.s32.totalorder %s1840_s15, 1  ;;  %p119_p10 = scmp.lt.s32.totalorder %s1840_s15, 3 }
   0xf   : > { %p1920_p11 = por %p106_p7, %p34_p0  ;;  %p1924_p12 = por %p112_p8, %p40_p3 }
  0x10   : > { %p1928_p13 = pnand %p1292_p9, %p119_p10  ;;  %s131_s29 = sshll.u32 %s3067_s1, 4  ;;  %s132_s29 = int_to_ptr.hbm [resolvable:$true] %s131_s29 }
  0x11   : > { %s1842_s30 = smov [#allocation5]   ;;  %p1342_p3 = scmp.lt.s32.totalorder %s1840_s15, 2 }
  0x12   : > { %p1325_p1 = pneg %p1928_p13  ;;  %s133_s4 = sshll.u32 %s1842_s30, 4  ;;  %s134_s4 = int_to_ptr.vmem [resolvable:$true] %s133_s4 }
  0x13   : > { %s143_s7 = sshll.u32 %s3068_s2, 4  ;;  %p1946_p7 = pnand %p1342_p3, %p1907_p5  ;;  %s144_s7 = int_to_ptr.hbm [resolvable:$true] %s143_s7 }
  0x14   : > { %p1326_p2 = pnand %p1325_p1, %p41_p4  ;;  %s1843_s9 = smov [#allocation7]  }
  0x15   : > { %s145_s10 = sshll.u32 %s1843_s9, 4  ;;  %s156_s11 = sand.u32 1, %s1836_s14   ;;  %s146_s10 = int_to_ptr.vmem [resolvable:$true] %s145_s10 }
  0x16   : > { %1328 = dma.hbm_to_vmem [thread:$0]  (!%p1326_p2), %s132_s29, 128, %s134_s4, [#allocation6]  }
  0x17   : > { %1331 = dma.hbm_to_vmem [thread:$0]  (!%p1326_p2), %s144_s7, 128, %s146_s10, [#allocation6]  }
  0x18   : > { %s1296_s17 = sshll.u32 %s156_s11, 7  ;;  %s1310_s19 = sshll.u32 %s1840_s15, 7 }
  0x19   : > { %s165_s28 = scalar_lea.hbm %s3066_s0, %s1310_s19  ;;  %s160_s30 = scalar_lea.vmem [#allocation2], %s1296_s17 }
  0x1a   : > { %s168_s5 = sshll.u32 %s160_s30, 4  ;;  %s166_s29 = sshll.u32 %s165_s28, 4  ;;  %s169_s5 = int_to_ptr.vmem [resolvable:$true] %s168_s5  ;;  %s167_s29 = int_to_ptr.hbm [resolvable:$true] %s166_s29 }
  0x1b   : > { %s157_s22 = scalar_lea.sflag [#allocation3], %s156_s11  ;;  %s1740_s4 = sshra.s32 %s167_s29, 4  ;;  %s1741_s4 = int_to_ptr.hbm [resolvable:$true] %s1740_s4 }
  0x1c   : > { %s1742_s6 = scalar_lea.hbm %s1741_s4, 128  ;;  %p1744_p8 = pneg %p1946_p7 }
  0x1d   : > { %p1743_p5 = scmp.ne.s32.totalorder %s1741_s4, %s1742_s6  ;;  %s1747_s10 = scalar_lea.hbm %s3066_s0, 256 }
  0x1e   : > { %p1748_p1 = scmp.lt.s32.totalorder %s1741_s4, %s3066_s0  ;;  %p1749_p2 = scmp.lt.s32.totalorder %s1747_s10, %s1742_s6 }
  0x1f   : > { %p1745_p9 = pnand %p1744_p8, %p1743_p5 }
  0x20   : > { %p1750_p3 = por %p1749_p2, %p1748_p1 }
  0x21   : > { %p1746_p10 = pneg %p1745_p9 }
  0x23   : > { %p1751_p0 = pnand %p1750_p3, %p1746_p10 }
  0x25   : > { %1754 = shalt.err (!%p1751_p0)
}
  0x26   : > { %s1844_s11 = smov 128   ;;  %s1845_s17 = smov 8  }
  0x27   : > { %1335 = dma.hbm_to_vmem [thread:$0]  (!%p1946_p7), %s167_s29, 2048, %s169_s5, %s157_s22, %s1844_s11, %s1844_s11, %s1845_s17  }
  0x28   : > { %180 = sbr.rel (%p1928_p13) target bundleno = 274 (0x112), region = 32 }
  0x2d   : > { %s1968_s27 = sand.u32 1, %s1832_s13  }
  0x2e   : > { %s1300_s28 = sshll.u32 %s1968_s27, 7  ;;  %s183_s30 = scalar_lea.sflag [#allocation3], %s1968_s27 }
  0x2f   : > { %s1972_s4 = scalar_lea.vmem [#allocation2], %s1300_s28 }
  0x30   : > { %1815 = dma.done.wait (%p1913_p6), %s183_s30, 2048  }
  0x31   : > { %1817 = vsyncadd (%p1913_p6), %s183_s30, 4294965248 }
  0x32   : > { %1819 = dma.done.wait (%p41_p4), [#allocation6], 256  }
  0x33   : > { %1821 = vsyncadd (%p41_p4), [#allocation6], 4294967040  ;;  %v239_v0 = vld [vmem:[#allocation7] sm:$0x1]  ;;  %v1983_v1 = vld [vmem:[%s1972_s4] sm:$0xff]  ;;  %s1303_s23 = sshll.u32 %s1968_s27, 10 }
  0x34   : > { %v240_v2 = vmax.f32 %v239_v0, 1e-08  ;;  %v1384_v3 = vld [vmem:[#allocation5] ss:$0 sm:$0xff]  ;;  %v1986_v4 = vld [vmem:[%s1972_s4 + $0x8] sm:$0xff]  ;;  %v1989_v5 = vld [vmem:[%s1972_s4 + $0x10] sm:$0xff] }
  0x35   : > { %v1992_v6 = vld [vmem:[%s1972_s4 + $0x18] sm:$0xff]  ;;  %v1995_v8 = vld [vmem:[%s1972_s4 + $0x20] sm:$0xff]  ;;  %v1998_v9 = vld [vmem:[%s1972_s4 + $0x28] sm:$0xff]  ;;  %v259_v11 = vsub.f32 %v1983_v1, %v1384_v3  ;;  %v260_v13 = vsub.f32 %v1986_v4, %v1384_v3  ;;  %v261_v14 = vsub.f32 %v1989_v5, %v1384_v3  ;;  %s2224_s26 = scalar_lea.vmem [#allocation8], %s1303_s23  ;;  %s1312_s8 = sshll.u32 %s1889_s16, 10 }
  0x36   : > { %v241_v7 = vmul.f32 2.0, %v240_v2  ;;  %v2001_v10 = vld [vmem:[%s1972_s4 + $0x30] sm:$0xff]  ;;  %v262_v15 = vsub.f32 %v1992_v6, %v1384_v3  ;;  %v2010_v16 = vld [vmem:[%s1972_s4 + $0x38] sm:$0xff]  ;;  %v2013_v17 = vld [vmem:[%s1972_s4 + $0x40] sm:$0xff]  ;;  %v263_v19 = vsub.f32 %v1995_v8, %v1384_v3  ;;  %v264_v20 = vsub.f32 %v1998_v9, %v1384_v3  ;;  %s1195_s22 = scalar_lea.hbm %s3069_s3, %s1312_s8  ;;  %s1196_s16 = sshll.u32 %s2224_s26, 4  ;;  %s1197_s16 = int_to_ptr.vmem [resolvable:$true] %s1196_s16 }
  0x37   : > { %v2016_v18 = vld [vmem:[%s1972_s4 + $0x48] sm:$0xff]  ;;  %v265_v21 = vsub.f32 %v2001_v10, %v1384_v3  ;;  %v2022_v22 = vld [vmem:[%s1972_s4 + $0x50] sm:$0xff]  ;;  %v2025_v23 = vld [vmem:[%s1972_s4 + $0x58] sm:$0xff]  ;;  %v2036_v28 = vmul.f32 %v259_v11, %v259_v11  ;;  %v266_v29 = vsub.f32 %v2010_v16, %v1384_v3  ;;  %v267_v30 = vsub.f32 %v2013_v17, %v1384_v3  ;;  %s1198_s6 = sshll.u32 %s1195_s22, 4  ;;  %s1183_s7 = scalar_lea.sflag [#allocation4], %s1968_s27  ;;  %s1199_s6 = int_to_ptr.hbm [resolvable:$true] %s1198_s6 }
  0x38   : > { %v2004_v12 = vmul.f32 %v241_v7, %v240_v2  ;;  %v2030_v25 = vld [vmem:[%s1972_s4 + $0x60] sm:$0xff]  ;;  %v2033_v26 = vld [vmem:[%s1972_s4 + $0x68] sm:$0xff]  ;;  %v2041_v31 = vld [vmem:[%s1972_s4 + $0x70] sm:$0xff]  ;;  %v2043_v32 = vmul.f32 %v260_v13, %v260_v13  ;;  %v2045_v33 = vmul.f32 %v261_v14, %v261_v14  ;;  %v2047_v34 = vmul.f32 %v262_v15, %v262_v15  ;;  %s1784_s9 = sshra.s32 %s1199_s6, 4  ;;  %s1790_s11 = scalar_lea.hbm %s3069_s3, 2048  ;;  %s1785_s9 = int_to_ptr.hbm [resolvable:$true] %s1784_s9 }
  0x39   : > { %3084 = vst [vmem:[#allocation12_spill] sm:$0xff] %v2030_v25  ;;  %v268_v35 = vsub.f32 %v2016_v18, %v1384_v3  ;;  %v357_v36 = vld [vmem:[#allocation7 + $0x1] sm:$0x1]  ;;  %v2050_v37 = vld [vmem:[#allocation5 + $0x1] ss:$0 sm:$0xff]  ;;  %v2052_v38 = vmul.f32 %v263_v19, %v263_v19  ;;  %v2054_v39 = vmul.f32 %v264_v20, %v264_v20  ;;  %v2056_v40 = vmul.f32 %v265_v21, %v265_v21  ;;  %v2060_v42 = vld [vmem:[%s1972_s4 + $0x78] sm:$0xff]  ;;  %p1791_p0 = scmp.lt.s32.totalorder %s1785_s9, %s3069_s3 }
  0x3a   : > { %1392 = vrcp.f32 %v2004_v12  ;;  %v252_v24 = vand.u32 2147483647, %v2004_v12  ;;  %3085 = vst [vmem:[#allocation13_spill] sm:$0xff] %v2033_v26  ;;  %v254_v27 = vand.u32 2147483648, %v2004_v12  ;;  %v269_v41 = vsub.f32 %v2022_v22, %v1384_v3  ;;  %v475_v0 = vld [vmem:[#allocation7 + $0x2] sm:$0x1] }
  0x3b   : > { %3086 = vst [vmem:[#allocation14_spill] sm:$0xff] %v2041_v31  ;;  %vm248_vm0 = vweird.f32 %v2004_v12  ;;  %v270_v43 = vsub.f32 %v2025_v23, %v1384_v3  ;;  %v271_v44 = vsub.f32 %v2030_v25, %v1384_v3  ;;  %v272_v45 = vsub.f32 %v2033_v26, %v1384_v3  ;;  %s1786_s10 = scalar_lea.hbm %s1785_s9, 1024 }
  0x3c   : > { %3087 = vst [vmem:[#allocation15_spill] sm:$0xff] %v2060_v42  ;;  %vm2066_vm1 = vcmp.eq.f32.partialorder %v252_v24, 8.507059e+37  ;;  %v255_v47 = vor.u32 1.1754944e-38, %v254_v27  ;;  %v2070_v48 = vmul.f32 %v266_v29, %v266_v29  ;;  %v2072_v49 = vmul.f32 %v267_v30, %v267_v30  ;;  %p1787_p4 = scmp.ne.s32.totalorder %s1785_s9, %s1786_s10  ;;  %p1792_p7 = scmp.lt.s32.totalorder %s1790_s11, %s1786_s10 }
  0x3d   : > { %v358_v50 = vmax.f32 %v357_v36, 1e-08  ;;  %v2074_v52 = vmul.f32 %v268_v35, %v268_v35  ;;  %v273_v53 = vsub.f32 %v2041_v31, %v1384_v3  ;;  %v274_v54 = vsub.f32 %v2060_v42, %v1384_v3 }
  0x3e   : > { %v377_v55 = vsub.f32 %v1983_v1, %v2050_v37  ;;  %v2081_v57 = vmul.f32 %v269_v41, %v269_v41  ;;  %v378_v59 = vsub.f32 %v1986_v4, %v2050_v37  ;;  %v2085_v60 = vmul.f32 %v270_v43, %v270_v43  ;;  %p1788_p6 = pnand %p1787_p4, %p1920_p11  ;;  %p1793_p5 = por %p1792_p7, %p1791_p0 }
  0x3f   : > { %v359_v58 = vmul.f32 2.0, %v358_v50  ;;  %v2087_v61 = vmul.f32 %v271_v44, %v271_v44  ;;  %v2089_v62 = vmul.f32 %v272_v45, %v272_v45  ;;  %v379_v63 = vsub.f32 %v1989_v5, %v2050_v37 }
  0x40   : > { %v1393_v51 = vpop.eup %1392  ;;  %v380_v7 = vsub.f32 %v1992_v6, %v2050_v37  ;;  %v2097_v11 = vmul.f32 %v273_v53, %v273_v53  ;;  %v2099_v13 = vmul.f32 %v274_v54, %v274_v54  ;;  %v2101_v14 = vmul.f32 %v377_v55, %v377_v55  ;;  %p1789_p13 = pneg %p1788_p6 }
  0x41   : > { %v244_v56 = vmul.f32 %v1393_v51, %v2004_v12  ;;  %vm249_vm2 = vweird.f32 %v1393_v51  ;;  %v2093_v3 = vmul.f32 %v359_v58, %v358_v50  ;;  %v381_v15 = vsub.f32 %v1995_v8, %v2050_v37 }
  0x42   : > { %v2106_v20 = vmul.f32 %v378_v59, %v378_v59  ;;  %v476_v21 = vmax.f32 %v475_v0, 1e-08  ;;  %vm2110_vm3 = vmor %vm248_vm0, %vm249_vm2  ;;  %v2114_v27 = vmul.f32 %v379_v63, %v379_v63  ;;  %v382_v29 = vsub.f32 %v1998_v9, %v2050_v37  ;;  %p1794_p8 = pnand %p1793_p5, %p1789_p13 }
  0x43   : > { %v245_v2 = vsub.f32 1.0, %v244_v56  ;;  %1394 = vrcp.f32 %v2093_v3  ;;  %v383_v30 = vsub.f32 %v2001_v10, %v2050_v37  ;;  %v384_v35 = vsub.f32 %v2010_v16, %v2050_v37 }
  0x44   : > { %v370_v41 = vand.u32 2147483647, %v2093_v3  ;;  %v372_v12 = vand.u32 2147483648, %v2093_v3  ;;  %v2124_v43 = vmul.f32 %v380_v7, %v380_v7  ;;  %v2126_v44 = vmul.f32 %v381_v15, %v381_v15 }
  0x45   : > { %v246_v19 = vmul.f32 %v1393_v51, %v245_v2  ;;  %v385_v45 = vsub.f32 %v2013_v17, %v2050_v37  ;;  %v386_v50 = vsub.f32 %v2016_v18, %v2050_v37  ;;  %v387_v53 = vsub.f32 %v2022_v22, %v2050_v37 }
  0x46   : > { %v388_v55 = vsub.f32 %v2025_v23, %v2050_v37  ;;  %v389_v56 = vsub.f32 %v2030_v25, %v2050_v37  ;;  %v477_v58 = vmul.f32 2.0, %v476_v21  ;;  %v2142_v63 = vmul.f32 %v382_v29, %v382_v29 }
  0x47   : > { %v247_v36 = vadd.f32 %v1393_v51, %v246_v19  ;;  %v2144_v0 = vmul.f32 %v383_v30, %v383_v30  ;;  %v2146_v2 = vmul.f32 %v384_v35, %v384_v35  ;;  %v390_v19 = vsub.f32 %v2033_v26, %v2050_v37 }
  0x48   : > { %v391_v24 = vsub.f32 %v2041_v31, %v2050_v37  ;;  %v2160_v29 = vmul.f32 %v386_v50, %v386_v50  ;;  %v2162_v30 = vmul.f32 %v477_v58, %v476_v21  ;;  %vm366_vm4 = vweird.f32 %v2093_v3 }
  0x49   : > { %v251_v54 = vsel %vm2110_vm3, %v1393_v51, %v247_v36  ;;  %v2148_v7 = vpop.eup %1394  ;;  %v2150_v51 = vor.u32 1.1754944e-38, %v372_v12  ;;  %v2164_v36 = vmul.f32 %v387_v53, %v387_v53  ;;  %v2166_v12 = vmul.f32 %v388_v55, %v388_v55 }
  0x4a   : > { %v256_v59 = vsel %vm2066_vm1, %v255_v47, %v251_v54  ;;  %v362_v46 = vmul.f32 %v2148_v7, %v2093_v3  ;;  %v2158_v47 = vmul.f32 %v385_v45, %v385_v45  ;;  %v2168_v54 = vmul.f32 %v389_v56, %v389_v56 }
  0x4b   : > { %v257_v15 = vmul.f32 -1.0, %v256_v59  ;;  %v2170_v59 = vld [vmem:[#allocation5 + $0x2] ss:$0 sm:$0xff]  ;;  %vm367_vm5 = vweird.f32 %v2148_v7  ;;  %v2174_v31 = vmul.f32 %v390_v19, %v390_v19  ;;  %v2176_v45 = vmul.f32 %v391_v24, %v391_v24 }
  0x4c   : > { %v392_v21 = vsub.f32 %v2060_v42, %v2050_v37  ;;  %1396 = vrcp.f32 %v2162_v30  ;;  %v363_v24 = vsub.f32 1.0, %v362_v46  ;;  %vm2194_vm6 = vcmp.eq.f32.partialorder %v370_v41, 8.507059e+37  ;;  %vm2218_vm8 = vmor %vm366_vm4, %vm367_vm5 }
  0x4d   : > { %v291_v35 = vperm.slane %v257_v15, 0  ;;  %vm484_vm7 = vweird.f32 %v2162_v30 }
  0x4f   : > { %v292_v50 = vmul.f32 %v291_v35, %v2036_v28  ;;  %v293_v53 = vmul.f32 %v291_v35, %v2043_v32  ;;  %v294_v55 = vmul.f32 %v291_v35, %v2045_v33  ;;  %v295_v56 = vmul.f32 %v291_v35, %v2047_v34 }
  0x50   : > { %v296_v58 = vmul.f32 %v291_v35, %v2052_v38  ;;  %v297_v15 = vmul.f32 %v291_v35, %v2054_v39  ;;  %v298_v19 = vmul.f32 %v291_v35, %v2056_v40  ;;  %v2190_v28 = vsub.f32 %v1983_v1, %v2170_v59 }
  0x51   : > { %v308_v26 = vmul.f32 1.442695, %v292_v50  ;;  %v310_v37 = vmul.f32 1.442695, %v293_v53  ;;  %v312_v42 = vmul.f32 1.442695, %v294_v55  ;;  %v299_v25 = vmul.f32 %v291_v35, %v2070_v48 }
  0x52   : > { %v314_v32 = vmul.f32 1.442695, %v295_v56  ;;  %v300_v33 = vmul.f32 %v291_v35, %v2072_v49  ;;  %v2198_v38 = vmul.f32 %v392_v21, %v392_v21  ;;  %v316_v39 = vmul.f32 1.442695, %v296_v58  ;;  %v2202_v50 = vpop.eup %1396 }
  0x53   : > { %1398 = vpow2.f32 %v308_v26  ;;  %v318_v40 = vmul.f32 1.442695, %v297_v15  ;;  %v301_v46 = vmul.f32 %v291_v35, %v2074_v52  ;;  %v320_v53 = vmul.f32 1.442695, %v298_v19 }
  0x54   : > { %1400 = vpow2.f32 %v310_v37  ;;  %v302_v48 = vmul.f32 %v291_v35, %v2081_v57  ;;  %v303_v49 = vmul.f32 %v291_v35, %v2085_v60  ;;  %v304_v41 = vmul.f32 %v291_v35, %v2087_v61 }
  0x55   : > { %1402 = vpow2.f32 %v312_v42  ;;  %v305_v21 = vmul.f32 %v291_v35, %v2089_v62  ;;  %v306_v55 = vmul.f32 %v291_v35, %v2097_v11  ;;  %v322_v26 = vmul.f32 1.442695, %v299_v25 }
  0x56   : > { %1404 = vpow2.f32 %v314_v32  ;;  %v324_v56 = vmul.f32 1.442695, %v300_v33  ;;  %v326_v52 = vmul.f32 1.442695, %v301_v46  ;;  %v328_v58 = vmul.f32 1.442695, %v302_v48 }
  0x57   : > { %1406 = vpow2.f32 %v316_v39  ;;  %v330_v15 = vmul.f32 1.442695, %v303_v49  ;;  %v307_v57 = vmul.f32 %v291_v35, %v2099_v13  ;;  %v364_v42 = vmul.f32 %v2148_v7, %v363_v24 }
  0x58   : > { %1408 = vpow2.f32 %v318_v40  ;;  %v480_v60 = vmul.f32 %v2202_v50, %v2162_v30  ;;  %v332_v62 = vmul.f32 1.442695, %v304_v41  ;;  %v334_v25 = vmul.f32 1.442695, %v305_v21 }
  0x59   : > { %v1399_v61 = vpop.eup %1398  ;;  %1410 = vpow2.f32 %v320_v53  ;;  %v336_v11 = vmul.f32 1.442695, %v306_v55  ;;  %v365_v13 = vadd.f32 %v2148_v7, %v364_v42  ;;  %vm485_vm9 = vweird.f32 %v2202_v50 }
  0x5a   : > { %v1401_v37 = vpop.eup %1400  ;;  %340 = vst [vmem:[%s2224_s26] sm:$0xff] %v1399_v61  ;;  %1412 = vpow2.f32 %v322_v26  ;;  %v481_v35 = vsub.f32 1.0, %v480_v60  ;;  %v488_v24 = vand.u32 2147483647, %v2162_v30  ;;  %v490_v32 = vand.u32 2147483648, %v2162_v30  ;;  %vm2253_vm10 = vmor %vm484_vm7, %vm485_vm9 }
  0x5b   : > { %v1403_v3 = vpop.eup %1402  ;;  %341 = vst [vmem:[%s2224_s26 + $0x40] sm:$0xff] %v1401_v37  ;;  %1414 = vpow2.f32 %v324_v56  ;;  %v496_v33 = vsub.f32 %v1986_v4, %v2170_v59  ;;  %v369_v40 = vsel %vm2218_vm8, %v2148_v7, %v365_v13  ;;  %v497_v53 = vsub.f32 %v1989_v5, %v2170_v59 }
  0x5c   : > { %v1405_v39 = vpop.eup %1404  ;;  %342 = vst [vmem:[%s2224_s26 + $0x80] sm:$0xff] %v1403_v3  ;;  %1416 = vpow2.f32 %v326_v52  ;;  %v482_v46 = vmul.f32 %v2202_v50, %v481_v35  ;;  %v338_v49 = vmul.f32 1.442695, %v307_v57  ;;  %v374_v41 = vsel %vm2194_vm6, %v2150_v51, %v369_v40 }
  0x5d   : > { %v1407_v48 = vpop.eup %1406  ;;  %343 = vst [vmem:[%s2224_s26 + $0xc0] sm:$0xff] %v1405_v39  ;;  %1418 = vpow2.f32 %v328_v58  ;;  %v498_v21 = vsub.f32 %v1992_v6, %v2170_v59  ;;  %v375_v7 = vmul.f32 -1.0, %v374_v41  ;;  %v2259_v51 = vmul.f32 %v2190_v28, %v2190_v28 }
  0x5e   : > { %v1409_v55 = vpop.eup %1408  ;;  %344 = vst [vmem:[%s2224_s26 + $0x100] sm:$0xff] %v1407_v48  ;;  %1420 = vpow2.f32 %v330_v15  ;;  %v483_v26 = vadd.f32 %v2202_v50, %v482_v46  ;;  %vm2262_vm11 = vcmp.eq.f32.partialorder %v488_v24, 8.507059e+37  ;;  %v491_v58 = vor.u32 1.1754944e-38, %v490_v32 }
  0x5f   : > { %v1411_v34 = vpop.eup %1410  ;;  %345 = vst [vmem:[%s2224_s26 + $0x140] sm:$0xff] %v1409_v55  ;;  %1422 = vpow2.f32 %v332_v62  ;;  %v2266_v15 = vmul.f32 %v496_v33, %v496_v33  ;;  %v409_v57 = vperm.slane %v375_v7, 0  ;;  %v2269_v42 = vmul.f32 %v497_v53, %v497_v53 }
  0x60   : > { %v1413_v30 = vpop.eup %1412  ;;  %346 = vst [vmem:[%s2224_s26 + $0x180] sm:$0xff] %v1411_v34  ;;  %1424 = vpow2.f32 %v334_v25  ;;  %v2271_v28 = vmul.f32 %v498_v21, %v498_v21  ;;  %v487_v61 = vsel %vm2253_vm10, %v2202_v50, %v483_v26  ;;  %v499_v62 = vsub.f32 %v1995_v8, %v2170_v59 }
  0x61   : > { %v1415_v60 = vpop.eup %1414  ;;  %347 = vst [vmem:[%s2224_s26 + $0x1c0] sm:$0xff] %v1413_v30  ;;  %1426 = vpow2.f32 %v336_v11  ;;  %v500_v25 = vsub.f32 %v1998_v9, %v2170_v59  ;;  %v410_v37 = vmul.f32 %v409_v57, %v2101_v14  ;;  %v411_v13 = vmul.f32 %v409_v57, %v2106_v20 }
  0x62   : > { %v1417_v19 = vpop.eup %1416  ;;  %348 = vst [vmem:[%s2224_s26 + $0x200] sm:$0xff] %v1415_v60  ;;  %1428 = vpow2.f32 %v338_v49  ;;  %v412_v11 = vmul.f32 %v409_v57, %v2114_v27  ;;  %v413_v50 = vmul.f32 %v409_v57, %v2124_v43  ;;  %v414_v3 = vmul.f32 %v409_v57, %v2126_v44 }
  0x63   : > { %v1419_v35 = vpop.eup %1418  ;;  %349 = vst [vmem:[%s2224_s26 + $0x240] sm:$0xff] %v1417_v19  ;;  %v415_v24 = vmul.f32 %v409_v57, %v2142_v63  ;;  %v501_v32 = vsub.f32 %v2001_v10, %v2170_v59  ;;  %v426_v14 = vmul.f32 1.442695, %v410_v37  ;;  %v428_v39 = vmul.f32 1.442695, %v411_v13 }
  0x64   : > { %v1421_v33 = vpop.eup %1420  ;;  %350 = vst [vmem:[%s2224_s26 + $0x280] sm:$0xff] %v1419_v35  ;;  %v416_v20 = vmul.f32 %v409_v57, %v2144_v0  ;;  %v492_v27 = vsel %vm2262_vm11, %v491_v58, %v487_v61  ;;  %v430_v43 = vmul.f32 1.442695, %v412_v11  ;;  %v432_v44 = vmul.f32 1.442695, %v413_v50 }
  0x65   : > { %v1423_v40 = vpop.eup %1422  ;;  %351 = vst [vmem:[%s2224_s26 + $0x2c0] sm:$0xff] %v1421_v33  ;;  %v417_v63 = vmul.f32 %v409_v57, %v2146_v2  ;;  %v515_v46 = vmul.f32 %v499_v62, %v499_v62  ;;  %1430 = vpow2.f32 %v426_v14  ;;  %v434_v48 = vmul.f32 1.442695, %v414_v3 }
  0x66   : > { %v1425_v53 = vpop.eup %1424  ;;  %352 = vst [vmem:[%s2224_s26 + $0x300] sm:$0xff] %v1423_v40  ;;  %v418_v49 = vmul.f32 %v409_v57, %v2158_v47  ;;  %v419_v0 = vmul.f32 %v409_v57, %v2160_v29  ;;  %1432 = vpow2.f32 %v428_v39  ;;  %v436_v21 = vmul.f32 1.442695, %v415_v24 }
  0x67   : > { %v1427_v41 = vpop.eup %1426  ;;  %353 = vst [vmem:[%s2224_s26 + $0x340] sm:$0xff] %v1425_v53  ;;  %v420_v55 = vmul.f32 %v409_v57, %v2164_v36  ;;  %v421_v7 = vmul.f32 %v409_v57, %v2166_v12  ;;  %1434 = vpow2.f32 %v430_v43  ;;  %v438_v2 = vmul.f32 1.442695, %v416_v20 }
  0x68   : > { %v1429_v26 = vpop.eup %1428  ;;  %354 = vst [vmem:[%s2224_s26 + $0x380] sm:$0xff] %v1427_v41  ;;  %v422_v56 = vmul.f32 %v409_v57, %v2168_v54  ;;  %v423_v34 = vmul.f32 %v409_v57, %v2174_v31  ;;  %1436 = vpow2.f32 %v432_v44  ;;  %v440_v47 = vmul.f32 1.442695, %v417_v63 }
  0x69   : > { %355 = vst [vmem:[%s2224_s26 + $0x3c0] sm:$0xff] %v1429_v26  ;;  %v424_v29 = vmul.f32 %v409_v57, %v2176_v45  ;;  %v516_v52 = vmul.f32 %v500_v25, %v500_v25  ;;  %1438 = vpow2.f32 %v434_v48  ;;  %v442_v58 = vmul.f32 1.442695, %v418_v49 }
  0x6a   : > { %v444_v36 = vmul.f32 1.442695, %v419_v0  ;;  %v425_v12 = vmul.f32 %v409_v57, %v2198_v38  ;;  %1440 = vpow2.f32 %v436_v21  ;;  %v446_v30 = vmul.f32 1.442695, %v420_v55 }
  0x6b   : > { %v448_v60 = vmul.f32 1.442695, %v421_v7  ;;  %v493_v61 = vmul.f32 -1.0, %v492_v27  ;;  %v1431_v54 = vpop.eup %1430  ;;  %1442 = vpow2.f32 %v438_v2  ;;  %v450_v31 = vmul.f32 1.442695, %v422_v56 }
  0x6c   : > { %v452_v62 = vmul.f32 1.442695, %v423_v34  ;;  %v502_v45 = vsub.f32 %v2010_v16, %v2170_v59  ;;  %v1433_v19 = vpop.eup %1432  ;;  %458 = vst [vmem:[%s2224_s26 + $0x8] sm:$0xff] %v1431_v54  ;;  %1444 = vpow2.f32 %v440_v47  ;;  %v454_v25 = vmul.f32 1.442695, %v424_v29  ;;  %v3100_v47 = vld [vmem:[#allocation12_spill] sm:$0xff] }
  0x6d   : > { %v2312_v37 = vperm.slane %v493_v61, 0  ;;  %v517_v38 = vmul.f32 %v501_v32, %v501_v32  ;;  %v1435_v57 = vpop.eup %1434  ;;  %459 = vst [vmem:[%s2224_s26 + $0x48] sm:$0xff] %v1433_v19  ;;  %1446 = vpow2.f32 %v442_v58  ;;  %v456_v13 = vmul.f32 1.442695, %v425_v12  ;;  %v593_v19 = vld [vmem:[#allocation7 + $0x3] sm:$0x1] }
  0x6e   : > { %v503_v11 = vsub.f32 %v2013_v17, %v2170_v59  ;;  %v504_v35 = vsub.f32 %v2016_v18, %v2170_v59  ;;  %v1437_v50 = vpop.eup %1436  ;;  %460 = vst [vmem:[%s2224_s26 + $0x88] sm:$0xff] %v1435_v57  ;;  %1448 = vpow2.f32 %v444_v36  ;;  %v518_v20 = vmul.f32 %v502_v45, %v502_v45 }
  0x6f   : > { %v528_v3 = vmul.f32 %v2312_v37, %v2259_v51  ;;  %v529_v24 = vmul.f32 %v2312_v37, %v2266_v15  ;;  %v530_v32 = vmul.f32 %v2312_v37, %v2269_v42  ;;  %v1439_v33 = vpop.eup %1438  ;;  %461 = vst [vmem:[%s2224_s26 + $0xc8] sm:$0xff] %v1437_v50  ;;  %1450 = vpow2.f32 %v446_v30 }
  0x70   : > { %v531_v14 = vmul.f32 %v2312_v37, %v2271_v28  ;;  %v532_v39 = vmul.f32 %v2312_v37, %v515_v46  ;;  %v1441_v27 = vpop.eup %1440  ;;  %462 = vst [vmem:[%s2224_s26 + $0x108] sm:$0xff] %v1439_v33  ;;  %1452 = vpow2.f32 %v448_v60  ;;  %v533_v51 = vmul.f32 %v2312_v37, %v516_v52  ;;  %v3101_v52 = vld [vmem:[#allocation13_spill] sm:$0xff]  ;;  %v3102_v60 = vld [vmem:[#allocation14_spill] sm:$0xff] }
  0x71   : > { %v505_v15 = vsub.f32 %v2022_v22, %v2170_v59  ;;  %v506_v42 = vsub.f32 %v2025_v23, %v2170_v59  ;;  %v1443_v40 = vpop.eup %1442  ;;  %463 = vst [vmem:[%s2224_s26 + $0x148] sm:$0xff] %v1441_v27  ;;  %1454 = vpow2.f32 %v450_v31  ;;  %v544_v28 = vmul.f32 1.442695, %v528_v3  ;;  %v3103_v3 = vld [vmem:[#allocation15_spill] sm:$0xff] }
  0x72   : > { %v546_v43 = vmul.f32 1.442695, %v529_v24  ;;  %v519_v44 = vmul.f32 %v503_v11, %v503_v11  ;;  %v1445_v63 = vpop.eup %1444  ;;  %464 = vst [vmem:[%s2224_s26 + $0x188] sm:$0xff] %v1443_v40  ;;  %1456 = vpow2.f32 %v452_v62  ;;  %v548_v46 = vmul.f32 1.442695, %v530_v32 }
  0x73   : > { %v550_v53 = vmul.f32 1.442695, %v531_v14  ;;  %v534_v48 = vmul.f32 %v2312_v37, %v517_v38  ;;  %v1447_v49 = vpop.eup %1446  ;;  %465 = vst [vmem:[%s2224_s26 + $0x1c8] sm:$0xff] %v1445_v63  ;;  %1458 = vpow2.f32 %v454_v25  ;;  %v552_v0 = vmul.f32 1.442695, %v532_v39 }
  0x74   : > { %v535_v41 = vmul.f32 %v2312_v37, %v518_v20  ;;  %v520_v21 = vmul.f32 %v504_v35, %v504_v35  ;;  %v1449_v55 = vpop.eup %1448  ;;  %466 = vst [vmem:[%s2224_s26 + $0x208] sm:$0xff] %v1447_v49  ;;  %1460 = vpow2.f32 %v456_v13  ;;  %v554_v7 = vmul.f32 1.442695, %v533_v51  ;;  %v2360_v32 = vld [vmem:[#allocation5 + $0x3] ss:$0 sm:$0xff] }
  0x75   : > { %v521_v26 = vmul.f32 %v505_v15, %v505_v15  ;;  %v522_v2 = vmul.f32 %v506_v42, %v506_v42  ;;  %v1451_v56 = vpop.eup %1450  ;;  %467 = vst [vmem:[%s2224_s26 + $0x248] sm:$0xff] %v1449_v55  ;;  %1462 = vpow2.f32 %v544_v28  ;;  %v536_v34 = vmul.f32 %v2312_v37, %v519_v44 }
  0x76   : > { %v507_v29 = vsub.f32 %v3100_v47, %v2170_v59  ;;  %v508_v58 = vsub.f32 %v3101_v52, %v2170_v59  ;;  %v1453_v36 = vpop.eup %1452  ;;  %468 = vst [vmem:[%s2224_s26 + $0x288] sm:$0xff] %v1451_v56  ;;  %1464 = vpow2.f32 %v546_v43  ;;  %v556_v12 = vmul.f32 1.442695, %v534_v48 }
  0x77   : > { %v537_v30 = vmul.f32 %v2312_v37, %v520_v21  ;;  %v509_v61 = vsub.f32 %v3102_v60, %v2170_v59  ;;  %v1455_v54 = vpop.eup %1454  ;;  %469 = vst [vmem:[%s2224_s26 + $0x2c8] sm:$0xff] %v1453_v36  ;;  %1466 = vpow2.f32 %v548_v46  ;;  %v538_v31 = vmul.f32 %v2312_v37, %v521_v26 }
  0x78   : > { %v523_v62 = vmul.f32 %v507_v29, %v507_v29  ;;  %v524_v45 = vmul.f32 %v508_v58, %v508_v58  ;;  %v1457_v25 = vpop.eup %1456  ;;  %470 = vst [vmem:[%s2224_s26 + $0x308] sm:$0xff] %v1455_v54  ;;  %1468 = vpow2.f32 %v550_v53  ;;  %v558_v38 = vmul.f32 1.442695, %v535_v41 }
  0x79   : > { %v539_v57 = vmul.f32 %v2312_v37, %v522_v2  ;;  %v525_v13 = vmul.f32 %v509_v61, %v509_v61  ;;  %v1459_v11 = vpop.eup %1458  ;;  %471 = vst [vmem:[%s2224_s26 + $0x348] sm:$0xff] %v1457_v25  ;;  %1470 = vpow2.f32 %v552_v0  ;;  %v560_v35 = vmul.f32 1.442695, %v536_v34 }
  0x7a   : > { %v540_v50 = vmul.f32 %v2312_v37, %v523_v62  ;;  %v510_v24 = vsub.f32 %v3103_v3, %v2170_v59  ;;  %v1461_v33 = vpop.eup %1460  ;;  %472 = vst [vmem:[%s2224_s26 + $0x388] sm:$0xff] %v1459_v11  ;;  %1472 = vpow2.f32 %v554_v7  ;;  %v562_v14 = vmul.f32 1.442695, %v537_v30  ;;  %v711_v62 = vld [vmem:[#allocation7 + $0x4] sm:$0x1] }
  0x7b   : > { %v541_v39 = vmul.f32 %v2312_v37, %v524_v45  ;;  %v594_v20 = vmax.f32 %v593_v19, 1e-08  ;;  %v1463_v27 = vpop.eup %1462  ;;  %473 = vst [vmem:[%s2224_s26 + $0x3c8] sm:$0xff] %v1461_v33  ;;  %1474 = vpow2.f32 %v556_v12  ;;  %v564_v51 = vmul.f32 1.442695, %v538_v31 }
  0x7c   : > { %v542_v15 = vmul.f32 %v2312_v37, %v525_v13  ;;  %v526_v42 = vmul.f32 %v510_v24, %v510_v24  ;;  %v1465_v40 = vpop.eup %1464  ;;  %576 = vst [vmem:[%s2224_s26 + $0x10] sm:$0xff] %v1463_v27  ;;  %1476 = vpow2.f32 %v558_v38  ;;  %v566_v59 = vmul.f32 1.442695, %v539_v57  ;;  %v2423_v27 = vld [vmem:[#allocation5 + $0x4] ss:$0 sm:$0xff] }
  0x7d   : > { %v1467_v28 = vpop.eup %1466  ;;  %577 = vst [vmem:[%s2224_s26 + $0x50] sm:$0xff] %v1465_v40  ;;  %1478 = vpow2.f32 %v560_v35  ;;  %v568_v43 = vmul.f32 1.442695, %v540_v50  ;;  %v595_v63 = vmul.f32 2.0, %v594_v20  ;;  %v570_v53 = vmul.f32 1.442695, %v541_v39 }
  0x7e   : > { %v543_v44 = vmul.f32 %v2312_v37, %v526_v42  ;;  %v1469_v46 = vpop.eup %1468  ;;  %578 = vst [vmem:[%s2224_s26 + $0x90] sm:$0xff] %v1467_v28  ;;  %1480 = vpow2.f32 %v562_v14  ;;  %v613_v48 = vsub.f32 %v1983_v1, %v2360_v32  ;;  %v572_v0 = vmul.f32 1.442695, %v542_v15 }
  0x7f   : > { %v1471_v49 = vpop.eup %1470  ;;  %579 = vst [vmem:[%s2224_s26 + $0xd0] sm:$0xff] %v1469_v46  ;;  %1482 = vpow2.f32 %v564_v51  ;;  %v614_v41 = vsub.f32 %v1986_v4, %v2360_v32  ;;  %v2377_v7 = vmul.f32 %v595_v63, %v594_v20  ;;  %v615_v26 = vsub.f32 %v1989_v5, %v2360_v32 }
  0x80   : > { %v1473_v21 = vpop.eup %1472  ;;  %580 = vst [vmem:[%s2224_s26 + $0x110] sm:$0xff] %v1471_v49  ;;  %1484 = vpow2.f32 %v566_v59  ;;  %v574_v37 = vmul.f32 1.442695, %v543_v44  ;;  %v2382_v56 = vmul.f32 %v613_v48, %v613_v48  ;;  %v616_v34 = vsub.f32 %v1992_v6, %v2360_v32 }
  0x81   : > { %v1475_v55 = vpop.eup %1474  ;;  %581 = vst [vmem:[%s2224_s26 + $0x150] sm:$0xff] %v1473_v21  ;;  %1486 = vpow2.f32 %v568_v43  ;;  %v608_v58 = vand.u32 2147483648, %v2377_v7  ;;  %v2388_v36 = vmul.f32 %v614_v41, %v614_v41  ;;  %v617_v12 = vsub.f32 %v1995_v8, %v2360_v32 }
  0x82   : > { %v1477_v2 = vpop.eup %1476  ;;  %582 = vst [vmem:[%s2224_s26 + $0x190] sm:$0xff] %v1475_v55  ;;  %1488 = vpow2.f32 %v570_v53  ;;  %v618_v61 = vsub.f32 %v1998_v9, %v2360_v32  ;;  %v619_v54 = vsub.f32 %v2001_v10, %v2360_v32  ;;  %v620_v31 = vsub.f32 %v2010_v16, %v2360_v32 }
  0x83   : > { %v1479_v29 = vpop.eup %1478  ;;  %583 = vst [vmem:[%s2224_s26 + $0x1d0] sm:$0xff] %v1477_v2  ;;  %1490 = vpow2.f32 %v572_v0  ;;  %v2401_v19 = vmul.f32 %v615_v26, %v615_v26  ;;  %v621_v25 = vsub.f32 %v2013_v17, %v2360_v32  ;;  %v622_v38 = vsub.f32 %v2016_v18, %v2360_v32 }
  0x84   : > { %v1481_v30 = vpop.eup %1480  ;;  %584 = vst [vmem:[%s2224_s26 + $0x210] sm:$0xff] %v1479_v29  ;;  %1492 = vpow2.f32 %v574_v37  ;;  %vm602_vm12 = vweird.f32 %v2377_v7  ;;  %v606_v13 = vand.u32 2147483647, %v2377_v7  ;;  %v623_v11 = vsub.f32 %v2022_v22, %v2360_v32  ;;  %v829_v37 = vld [vmem:[#allocation7 + $0x5] sm:$0x1] }
  0x85   : > { %v1483_v45 = vpop.eup %1482  ;;  %585 = vst [vmem:[%s2224_s26 + $0x250] sm:$0xff] %v1481_v30  ;;  %1494 = vrcp.f32 %v2377_v7  ;;  %v624_v35 = vsub.f32 %v2025_v23, %v2360_v32  ;;  %v625_v50 = vsub.f32 %v3100_v47, %v2360_v32  ;;  %v2417_v33 = vmul.f32 %v616_v34, %v616_v34 }
  0x86   : > { %v1485_v57 = vpop.eup %1484  ;;  %586 = vst [vmem:[%s2224_s26 + $0x290] sm:$0xff] %v1483_v45  ;;  %v2419_v14 = vmul.f32 %v617_v12, %v617_v12  ;;  %v626_v39 = vsub.f32 %v3101_v52, %v2360_v32  ;;  %v712_v20 = vmax.f32 %v711_v62, 1e-08  ;;  %v2426_v15 = vor.u32 1.1754944e-38, %v608_v58 }
  0x87   : > { %v1487_v24 = vpop.eup %1486  ;;  %587 = vst [vmem:[%s2224_s26 + $0x2d0] sm:$0xff] %v1485_v57  ;;  %v2428_v42 = vmul.f32 %v618_v61, %v618_v61  ;;  %v2430_v40 = vmul.f32 %v619_v54, %v619_v54  ;;  %v2432_v59 = vmul.f32 %v620_v31, %v620_v31  ;;  %v2435_v43 = vmul.f32 %v621_v25, %v621_v25 }
  0x88   : > { %v1489_v51 = vpop.eup %1488  ;;  %588 = vst [vmem:[%s2224_s26 + $0x310] sm:$0xff] %v1487_v24  ;;  %v2437_v44 = vmul.f32 %v622_v38, %v622_v38  ;;  %v627_v63 = vsub.f32 %v3102_v60, %v2360_v32  ;;  %v713_v46 = vmul.f32 2.0, %v712_v20  ;;  %vm2442_vm13 = vcmp.eq.f32.partialorder %v606_v13, 8.507059e+37 }
  0x89   : > { %v1491_v28 = vpop.eup %1490  ;;  %589 = vst [vmem:[%s2224_s26 + $0x350] sm:$0xff] %v1489_v51  ;;  %v2446_v49 = vmul.f32 %v623_v11, %v623_v11  ;;  %v2448_v0 = vmul.f32 %v624_v35, %v624_v35  ;;  %v2450_v41 = vmul.f32 %v625_v50, %v625_v50  ;;  %v628_v21 = vsub.f32 %v3103_v3, %v2360_v32 }
  0x8a   : > { %v1493_v53 = vpop.eup %1492  ;;  %590 = vst [vmem:[%s2224_s26 + $0x390] sm:$0xff] %v1491_v28  ;;  %v2455_v26 = vmul.f32 %v626_v39, %v626_v39  ;;  %v2457_v2 = vmul.f32 %v713_v46, %v712_v20  ;;  %v731_v34 = vsub.f32 %v1983_v1, %v2423_v27  ;;  %v732_v29 = vsub.f32 %v1986_v4, %v2423_v27 }
  0x8b   : > { %v1495_v55 = vpop.eup %1494  ;;  %591 = vst [vmem:[%s2224_s26 + $0x3d0] sm:$0xff] %v1493_v53  ;;  %v733_v12 = vsub.f32 %v1989_v5, %v2423_v27  ;;  %v734_v32 = vsub.f32 %v1992_v6, %v2423_v27  ;;  %v735_v30 = vsub.f32 %v1995_v8, %v2423_v27  ;;  %v2470_v61 = vmul.f32 %v627_v63, %v627_v63 }
  0x8c   : > { %v598_v58 = vmul.f32 %v1495_v55, %v2377_v7  ;;  %1496 = vrcp.f32 %v2457_v2  ;;  %v736_v1 = vsub.f32 %v1998_v9, %v2423_v27  ;;  %v830_v54 = vmax.f32 %v829_v37, 1e-08 }
  0x8d   : > { %vm603_vm14 = vweird.f32 %v1495_v55  ;;  %v2475_v31 = vmul.f32 %v628_v21, %v628_v21  ;;  %v726_v5 = vand.u32 2147483648, %v2457_v2  ;;  %v2478_v62 = vmul.f32 %v731_v34, %v731_v34 }
  0x8e   : > { %v599_v4 = vsub.f32 1.0, %v598_v58  ;;  %v2480_v6 = vmul.f32 %v732_v29, %v732_v29  ;;  %v737_v8 = vsub.f32 %v2001_v10, %v2423_v27  ;;  %v738_v45 = vsub.f32 %v2010_v16, %v2423_v27  ;;  %vm2494_vm15 = vmor %vm602_vm12, %vm603_vm14 }
  0x8f   : > { %v2486_v38 = vmul.f32 %v733_v12, %v733_v12  ;;  %v2488_v9 = vmul.f32 %v734_v32, %v734_v32  ;;  %v2490_v57 = vmul.f32 %v735_v30, %v735_v30  ;;  %v724_v11 = vand.u32 2147483647, %v2457_v2 }
  0x90   : > { %v600_v25 = vmul.f32 %v1495_v55, %v599_v4  ;;  %v2499_v35 = vmul.f32 %v736_v1, %v736_v1  ;;  %v739_v10 = vsub.f32 %v2013_v17, %v2423_v27  ;;  %v831_v16 = vmul.f32 2.0, %v830_v54 }
  0x91   : > { %v2503_v24 = vor.u32 1.1754944e-38, %v726_v5  ;;  %v740_v39 = vsub.f32 %v2016_v18, %v2423_v27  ;;  %v741_v7 = vsub.f32 %v2022_v22, %v2423_v27  ;;  %v2511_v51 = vmul.f32 %v737_v8, %v737_v8 }
  0x92   : > { %v601_v50 = vadd.f32 %v1495_v55, %v600_v25  ;;  %v2509_v20 = vpop.eup %1496  ;;  %v2513_v28 = vmul.f32 %v738_v45, %v738_v45  ;;  %v742_v63 = vsub.f32 %v2025_v23, %v2423_v27  ;;  %v743_v17 = vsub.f32 %v3100_v47, %v2423_v27 }
  0x93   : > { %v716_v18 = vmul.f32 %v2509_v20, %v2457_v2  ;;  %v744_v22 = vsub.f32 %v3101_v52, %v2423_v27  ;;  %v2525_v53 = vmul.f32 %v831_v16, %v830_v54  ;;  %v2530_v37 = vmul.f32 %v739_v10, %v739_v10  ;;  %v2559_v54 = vld [vmem:[%s1972_s4] sm:$0xff] }
  0x94   : > { %v605_v46 = vsel %vm2494_vm15, %v1495_v55, %v601_v50  ;;  %v745_v23 = vsub.f32 %v3102_v60, %v2423_v27  ;;  %v746_v47 = vsub.f32 %v3103_v3, %v2423_v27  ;;  %v2536_v55 = vld [vmem:[#allocation5 + $0x5] ss:$0 sm:$0xff]  ;;  %v2538_v52 = vmul.f32 %v740_v39, %v740_v39 }
  0x95   : > { %v610_v21 = vsel %vm2442_vm13, %v2426_v15, %v605_v46  ;;  %v717_v29 = vsub.f32 1.0, %v716_v18  ;;  %v2540_v58 = vmul.f32 %v741_v7, %v741_v7  ;;  %vm720_vm0 = vweird.f32 %v2457_v2 }
  0x96   : > { %v611_v34 = vmul.f32 -1.0, %v610_v21  ;;  %vm721_vm1 = vweird.f32 %v2509_v20  ;;  %v2544_v15 = vmul.f32 %v742_v63, %v742_v63  ;;  %v2546_v48 = vmul.f32 %v743_v17, %v743_v17  ;;  %v2579_v63 = vld [vmem:[%s1972_s4 + $0x8] sm:$0xff] }
  0x97   : > { %v844_v60 = vand.u32 2147483648, %v2525_v53  ;;  %v2549_v27 = vmul.f32 %v744_v22, %v744_v22  ;;  %v2551_v12 = vmul.f32 %v745_v23, %v745_v23  ;;  %1498 = vrcp.f32 %v2525_v53  ;;  %vm2608_vm3 = vmor %vm720_vm0, %vm721_vm1 }
  0x98   : > { %v645_v3 = vperm.slane %v611_v34, 0  ;;  %v718_v32 = vmul.f32 %v2509_v20, %v717_v29  ;;  %v2555_v30 = vmul.f32 %v746_v47, %v746_v47  ;;  %v842_v1 = vand.u32 2147483647, %v2525_v53 }
  0x99   : > { %v2563_v4 = vsub.f32 %v2559_v54, %v2536_v55  ;;  %vm2572_vm2 = vcmp.eq.f32.partialorder %v724_v11, 8.507059e+37  ;;  %v2576_v39 = vor.u32 1.1754944e-38, %v844_v60  ;;  %vm838_vm4 = vweird.f32 %v2525_v53 }
  0x9a   : > { %v646_v5 = vmul.f32 %v645_v3, %v2382_v56  ;;  %v647_v8 = vmul.f32 %v645_v3, %v2388_v36  ;;  %v648_v45 = vmul.f32 %v645_v3, %v2401_v19  ;;  %v649_v25 = vmul.f32 %v645_v3, %v2417_v33 }
  0x9b   : > { %v650_v13 = vmul.f32 %v645_v3, %v2419_v14  ;;  %v651_v10 = vmul.f32 %v645_v3, %v2428_v42  ;;  %v652_v16 = vmul.f32 %v645_v3, %v2430_v40  ;;  %v850_v19 = vsub.f32 %v2579_v63, %v2536_v55  ;;  %v2586_v40 = vld [vmem:[%s1972_s4 + $0x10] sm:$0xff] }
  0x9c   : > { %v662_v56 = vmul.f32 1.442695, %v646_v5  ;;  %v664_v7 = vmul.f32 1.442695, %v647_v8  ;;  %v666_v36 = vmul.f32 1.442695, %v648_v45  ;;  %v653_v14 = vmul.f32 %v645_v3, %v2432_v59 }
  0x9d   : > { %v668_v33 = vmul.f32 1.442695, %v649_v25  ;;  %v654_v42 = vmul.f32 %v645_v3, %v2435_v43  ;;  %v851_v11 = vsub.f32 %v2586_v40, %v2536_v55  ;;  %v2590_v17 = vpop.eup %1498  ;;  %v670_v46 = vmul.f32 1.442695, %v650_v13  ;;  %v2600_v5 = vld [vmem:[%s1972_s4 + $0x18] sm:$0xff] }
  0x9e   : > { %1500 = vpow2.f32 %v662_v56  ;;  %v672_v18 = vmul.f32 1.442695, %v651_v10  ;;  %v655_v22 = vmul.f32 %v645_v3, %v2437_v44  ;;  %v674_v21 = vmul.f32 1.442695, %v652_v16 }
  0x9f   : > { %1502 = vpow2.f32 %v664_v7  ;;  %v656_v23 = vmul.f32 %v645_v3, %v2446_v49  ;;  %v657_v59 = vmul.f32 %v645_v3, %v2448_v0  ;;  %v658_v43 = vmul.f32 %v645_v3, %v2450_v41 }
  0xa0   : > { %1504 = vpow2.f32 %v666_v36  ;;  %v659_v47 = vmul.f32 %v645_v3, %v2455_v26  ;;  %v660_v34 = vmul.f32 %v645_v3, %v2470_v61  ;;  %v676_v29 = vmul.f32 1.442695, %v653_v14  ;;  %v2626_v36 = vld [vmem:[%s1972_s4 + $0x20] sm:$0xff] }
  0xa1   : > { %1506 = vpow2.f32 %v668_v33  ;;  %v661_v60 = vmul.f32 %v645_v3, %v2475_v31  ;;  %v852_v44 = vsub.f32 %v2600_v5, %v2536_v55  ;;  %v678_v49 = vmul.f32 1.442695, %v654_v42 }
  0xa2   : > { %1508 = vpow2.f32 %v670_v46  ;;  %v680_v0 = vmul.f32 1.442695, %v655_v22  ;;  %v682_v8 = vmul.f32 1.442695, %v656_v23  ;;  %v684_v26 = vmul.f32 1.442695, %v657_v59 }
  0xa3   : > { %1510 = vpow2.f32 %v672_v18  ;;  %v719_v61 = vadd.f32 %v2509_v20, %v718_v32  ;;  %v834_v31 = vmul.f32 %v2590_v17, %v2525_v53  ;;  %v686_v45 = vmul.f32 1.442695, %v658_v43 }
  0xa4   : > { %v1501_v3 = vpop.eup %1500  ;;  %1512 = vpow2.f32 %v674_v21  ;;  %v688_v25 = vmul.f32 1.442695, %v659_v47  ;;  %v690_v13 = vmul.f32 1.442695, %v660_v34  ;;  %v692_v10 = vmul.f32 1.442695, %v661_v60 }
  0xa5   : > { %v1503_v2 = vpop.eup %1502  ;;  %694 = vst [vmem:[%s2224_s26 + $0x18] sm:$0xff] %v1501_v3  ;;  %1514 = vpow2.f32 %v676_v29  ;;  %v723_v16 = vsel %vm2608_vm3, %v2509_v20, %v719_v61  ;;  %v835_v56 = vsub.f32 1.0, %v834_v31  ;;  %vm839_vm5 = vweird.f32 %v2590_v17  ;;  %v2664_v34 = vld [vmem:[%s1972_s4 + $0x30] sm:$0xff]  ;;  %v2669_v60 = vld [vmem:[%s1972_s4 + $0x38] sm:$0xff] }
  0xa6   : > { %v1505_v32 = vpop.eup %1504  ;;  %695 = vst [vmem:[%s2224_s26 + $0x58] sm:$0xff] %v1503_v2  ;;  %1516 = vpow2.f32 %v678_v49  ;;  %v728_v7 = vsel %vm2572_vm2, %v2503_v24, %v723_v16  ;;  %v853_v33 = vsub.f32 %v2626_v36, %v2536_v55  ;;  %v2634_v24 = vmul.f32 %v2563_v4, %v2563_v4  ;;  %v2649_v4 = vld [vmem:[%s1972_s4 + $0x28] sm:$0xff]  ;;  %vm2714_vm7 = vmor %vm838_vm4, %vm839_vm5 }
  0xa7   : > { %v1507_v20 = vpop.eup %1506  ;;  %696 = vst [vmem:[%s2224_s26 + $0x98] sm:$0xff] %v1505_v32  ;;  %1518 = vpow2.f32 %v680_v0  ;;  %v729_v14 = vmul.f32 -1.0, %v728_v7  ;;  %v836_v42 = vmul.f32 %v2590_v17, %v835_v56  ;;  %v2637_v46 = vmul.f32 %v850_v19, %v850_v19 }
  0xa8   : > { %v1509_v50 = vpop.eup %1508  ;;  %697 = vst [vmem:[%s2224_s26 + $0xd8] sm:$0xff] %v1507_v20  ;;  %1520 = vpow2.f32 %v682_v8  ;;  %v2639_v18 = vmul.f32 %v851_v11, %v851_v11  ;;  %v2641_v22 = vmul.f32 %v852_v44, %v852_v44  ;;  %v2646_v59 = vmul.f32 %v853_v33, %v853_v33 }
  0xa9   : > { %v1511_v21 = vpop.eup %1510  ;;  %698 = vst [vmem:[%s2224_s26 + $0x118] sm:$0xff] %v1509_v50  ;;  %1522 = vpow2.f32 %v684_v26  ;;  %v2644_v23 = vperm.slane %v729_v14, 0  ;;  %v854_v43 = vsub.f32 %v2649_v4, %v2536_v55  ;;  %v2655_v11 = vadd.f32 %v2590_v17, %v836_v42 }
  0xaa   : > { %v1513_v19 = vpop.eup %1512  ;;  %699 = vst [vmem:[%s2224_s26 + $0x158] sm:$0xff] %v1511_v21  ;;  %1524 = vpow2.f32 %v686_v45  ;;  %vm2659_vm6 = vcmp.eq.f32.partialorder %v842_v1, 8.507059e+37  ;;  %v855_v29 = vsub.f32 %v2664_v34, %v2536_v55  ;;  %v2673_v44 = vsub.f32 %v2669_v60, %v2536_v55 }
  0xab   : > { %v1515_v49 = vpop.eup %1514  ;;  %700 = vst [vmem:[%s2224_s26 + $0x198] sm:$0xff] %v1513_v19  ;;  %1526 = vpow2.f32 %v688_v25  ;;  %v764_v1 = vmul.f32 %v2644_v23, %v2478_v62  ;;  %v765_v0 = vmul.f32 %v2644_v23, %v2480_v6  ;;  %v766_v8 = vmul.f32 %v2644_v23, %v2486_v38 }
  0xac   : > { %v1517_v41 = vpop.eup %1516  ;;  %701 = vst [vmem:[%s2224_s26 + $0x1d8] sm:$0xff] %v1515_v49  ;;  %1528 = vpow2.f32 %v690_v13  ;;  %v767_v26 = vmul.f32 %v2644_v23, %v2488_v9  ;;  %v768_v61 = vmul.f32 %v2644_v23, %v2490_v57  ;;  %v769_v62 = vmul.f32 %v2644_v23, %v2499_v35 }
  0xad   : > { %v1519_v31 = vpop.eup %1518  ;;  %702 = vst [vmem:[%s2224_s26 + $0x218] sm:$0xff] %v1517_v41  ;;  %1530 = vpow2.f32 %v692_v10  ;;  %v780_v6 = vmul.f32 1.442695, %v764_v1  ;;  %v782_v3 = vmul.f32 1.442695, %v765_v0  ;;  %v770_v38 = vmul.f32 %v2644_v23, %v2511_v51  ;;  %v2743_v41 = vld [vmem:[%s1972_s4 + $0x48] sm:$0xff] }
  0xae   : > { %v1521_v45 = vpop.eup %1520  ;;  %703 = vst [vmem:[%s2224_s26 + $0x258] sm:$0xff] %v1519_v31  ;;  %v784_v25 = vmul.f32 1.442695, %v766_v8  ;;  %v786_v9 = vmul.f32 1.442695, %v767_v26  ;;  %v771_v57 = vmul.f32 %v2644_v23, %v2513_v28  ;;  %v2695_v13 = vmul.f32 %v854_v43, %v854_v43 }
  0xaf   : > { %v1523_v35 = vpop.eup %1522  ;;  %704 = vst [vmem:[%s2224_s26 + $0x298] sm:$0xff] %v1521_v45  ;;  %1532 = vpow2.f32 %v780_v6  ;;  %v788_v2 = vmul.f32 1.442695, %v768_v61  ;;  %v772_v10 = vmul.f32 %v2644_v23, %v2530_v37  ;;  %v2700_v16 = vmul.f32 %v855_v29, %v855_v29  ;;  %v2754_v6 = vld [vmem:[%s1972_s4 + $0x50] sm:$0xff] }
  0xb0   : > { %v1525_v51 = vpop.eup %1524  ;;  %705 = vst [vmem:[%s2224_s26 + $0x2d8] sm:$0xff] %v1523_v35  ;;  %1534 = vpow2.f32 %v782_v3  ;;  %v790_v56 = vmul.f32 1.442695, %v769_v62  ;;  %v773_v28 = vmul.f32 %v2644_v23, %v2538_v52  ;;  %v774_v32 = vmul.f32 %v2644_v23, %v2540_v58  ;;  %v2719_v52 = vld [vmem:[%s1972_s4 + $0x40] sm:$0xff] }
  0xb1   : > { %v1527_v7 = vpop.eup %1526  ;;  %706 = vst [vmem:[%s2224_s26 + $0x318] sm:$0xff] %v1525_v51  ;;  %1536 = vpow2.f32 %v784_v25  ;;  %v792_v33 = vmul.f32 1.442695, %v770_v38  ;;  %v775_v37 = vmul.f32 %v2644_v23, %v2544_v15  ;;  %v857_v58 = vsub.f32 %v2719_v52, %v2536_v55  ;;  %v2760_v25 = vld [vmem:[%s1972_s4 + $0x58] sm:$0xff] }
  0xb2   : > { %v1529_v14 = vpop.eup %1528  ;;  %707 = vst [vmem:[%s2224_s26 + $0x358] sm:$0xff] %v1527_v7  ;;  %1538 = vpow2.f32 %v786_v9  ;;  %v794_v42 = vmul.f32 1.442695, %v771_v57  ;;  %v776_v15 = vmul.f32 %v2644_v23, %v2546_v48  ;;  %v777_v53 = vmul.f32 %v2644_v23, %v2549_v27  ;;  %v2765_v9 = vld [vmem:[%s1972_s4 + $0x60] sm:$0xff]  ;;  %v2782_v7 = vld [vmem:[%s1972_s4 + $0x68] sm:$0xff] }
  0xb3   : > { %v1531_v50 = vpop.eup %1530  ;;  %708 = vst [vmem:[%s2224_s26 + $0x398] sm:$0xff] %v1529_v14  ;;  %1540 = vpow2.f32 %v788_v2  ;;  %v796_v21 = vmul.f32 1.442695, %v772_v10  ;;  %v778_v43 = vmul.f32 %v2644_v23, %v2551_v12  ;;  %v779_v19 = vmul.f32 %v2644_v23, %v2555_v30  ;;  %v2792_v14 = vld [vmem:[#allocation7 + $0x6] sm:$0x1] }
  0xb4   : > { %709 = vst [vmem:[%s2224_s26 + $0x3d8] sm:$0xff] %v1531_v50  ;;  %1542 = vpow2.f32 %v790_v56  ;;  %v798_v29 = vmul.f32 1.442695, %v773_v28  ;;  %v800_v48 = vmul.f32 1.442695, %v774_v32  ;;  %v841_v27 = vsel %vm2714_vm7, %v2590_v17, %v2655_v11 }
  0xb5   : > { %v1533_v49 = vpop.eup %1532  ;;  %1544 = vpow2.f32 %v792_v33  ;;  %v802_v1 = vmul.f32 1.442695, %v775_v37  ;;  %v804_v0 = vmul.f32 1.442695, %v776_v15  ;;  %v846_v12 = vsel %vm2659_vm6, %v2576_v39, %v841_v27 }
  0xb6   : > { %v1535_v30 = vpop.eup %1534  ;;  %812 = vst [vmem:[%s2224_s26 + $0x20] sm:$0xff] %v1533_v49  ;;  %1546 = vpow2.f32 %v794_v42  ;;  %v806_v23 = vmul.f32 1.442695, %v777_v53  ;;  %v847_v8 = vmul.f32 -1.0, %v846_v12  ;;  %v858_v17 = vsub.f32 %v2743_v41, %v2536_v55 }
  0xb7   : > { %v1537_v11 = vpop.eup %1536  ;;  %813 = vst [vmem:[%s2224_s26 + $0x60] sm:$0xff] %v1535_v30  ;;  %1548 = vpow2.f32 %v796_v21  ;;  %v808_v26 = vmul.f32 1.442695, %v778_v43  ;;  %v810_v47 = vmul.f32 1.442695, %v779_v19  ;;  %v872_v39 = vmul.f32 %v2673_v44, %v2673_v44 }
  0xb8   : > { %v1539_v61 = vpop.eup %1538  ;;  %814 = vst [vmem:[%s2224_s26 + $0xa0] sm:$0xff] %v1537_v11  ;;  %1550 = vpow2.f32 %v798_v29  ;;  %v2751_v62 = vperm.slane %v847_v8, 0  ;;  %v873_v31 = vmul.f32 %v857_v58, %v857_v58  ;;  %v859_v3 = vsub.f32 %v2754_v6, %v2536_v55 }
  0xb9   : > { %v1541_v38 = vpop.eup %1540  ;;  %815 = vst [vmem:[%s2224_s26 + $0xe0] sm:$0xff] %v1539_v61  ;;  %1552 = vpow2.f32 %v800_v48  ;;  %v874_v45 = vmul.f32 %v858_v17, %v858_v17  ;;  %v860_v44 = vsub.f32 %v2760_v25, %v2536_v55  ;;  %v861_v57 = vsub.f32 %v2765_v9, %v2536_v55  ;;  %v2806_v17 = vld [vmem:[%s1972_s4 + $0x70] sm:$0xff]  ;;  %v2813_v61 = vld [vmem:[%s1972_s4 + $0x78] sm:$0xff] }
  0xba   : > { %v1543_v35 = vpop.eup %1542  ;;  %816 = vst [vmem:[%s2224_s26 + $0x120] sm:$0xff] %v1541_v38  ;;  %1554 = vpow2.f32 %v802_v1  ;;  %v882_v2 = vmul.f32 %v2751_v62, %v2634_v24  ;;  %v883_v10 = vmul.f32 %v2751_v62, %v2637_v46  ;;  %v884_v51 = vmul.f32 %v2751_v62, %v2639_v18 }
  0xbb   : > { %v1545_v56 = vpop.eup %1544  ;;  %817 = vst [vmem:[%s2224_s26 + $0x160] sm:$0xff] %v1543_v35  ;;  %1556 = vpow2.f32 %v804_v0  ;;  %v885_v28 = vmul.f32 %v2751_v62, %v2641_v22  ;;  %v886_v32 = vmul.f32 %v2751_v62, %v2646_v59  ;;  %v862_v24 = vsub.f32 %v2782_v7, %v2536_v55 }
  0xbc   : > { %v1547_v46 = vpop.eup %1546  ;;  %818 = vst [vmem:[%s2224_s26 + $0x1a0] sm:$0xff] %v1545_v56  ;;  %1558 = vpow2.f32 %v806_v23  ;;  %v898_v33 = vmul.f32 1.442695, %v882_v2  ;;  %v900_v18 = vmul.f32 1.442695, %v883_v10  ;;  %v887_v37 = vmul.f32 %v2751_v62, %v2695_v13 }
  0xbd   : > { %v1549_v20 = vpop.eup %1548  ;;  %819 = vst [vmem:[%s2224_s26 + $0x1e0] sm:$0xff] %v1547_v46  ;;  %1560 = vpow2.f32 %v808_v26  ;;  %v902_v22 = vmul.f32 1.442695, %v884_v51  ;;  %v888_v59 = vmul.f32 %v2751_v62, %v2700_v16  ;;  %v875_v58 = vmul.f32 %v859_v3, %v859_v3 }
  0xbe   : > { %v1551_v42 = vpop.eup %1550  ;;  %820 = vst [vmem:[%s2224_s26 + $0x220] sm:$0xff] %v1549_v20  ;;  %1562 = vpow2.f32 %v810_v47  ;;  %v904_v15 = vmul.f32 1.442695, %v885_v28  ;;  %v889_v53 = vmul.f32 %v2751_v62, %v872_v39  ;;  %v876_v50 = vmul.f32 %v860_v44, %v860_v44 }
  0xbf   : > { %v1553_v13 = vpop.eup %1552  ;;  %821 = vst [vmem:[%s2224_s26 + $0x260] sm:$0xff] %v1551_v42  ;;  %1564 = vpow2.f32 %v898_v33  ;;  %v906_v21 = vmul.f32 1.442695, %v886_v32  ;;  %v890_v43 = vmul.f32 %v2751_v62, %v873_v31  ;;  %v877_v16 = vmul.f32 %v861_v57, %v861_v57 }
  0xc0   : > { %v1555_v19 = vpop.eup %1554  ;;  %822 = vst [vmem:[%s2224_s26 + $0x2a0] sm:$0xff] %v1553_v13  ;;  %1566 = vpow2.f32 %v900_v18  ;;  %v908_v29 = vmul.f32 1.442695, %v887_v37  ;;  %v891_v48 = vmul.f32 %v2751_v62, %v874_v45  ;;  %v948_v27 = vmax.f32 %v2792_v14, 1e-08 }
  0xc1   : > { %v1557_v49 = vpop.eup %1556  ;;  %823 = vst [vmem:[%s2224_s26 + $0x2e0] sm:$0xff] %v1555_v19  ;;  %1568 = vpow2.f32 %v902_v22  ;;  %v910_v1 = vmul.f32 1.442695, %v888_v59  ;;  %v892_v0 = vmul.f32 %v2751_v62, %v875_v58  ;;  %v878_v12 = vmul.f32 %v862_v24, %v862_v24  ;;  %v2829_v14 = vld [vmem:[#allocation5 + $0x6] ss:$0 sm:$0xff] }
  0xc2   : > { %v1559_v30 = vpop.eup %1558  ;;  %824 = vst [vmem:[%s2224_s26 + $0x320] sm:$0xff] %v1557_v49  ;;  %1570 = vpow2.f32 %v904_v15  ;;  %v912_v23 = vmul.f32 1.442695, %v889_v53  ;;  %v893_v8 = vmul.f32 %v2751_v62, %v876_v50  ;;  %v863_v11 = vsub.f32 %v2806_v17, %v2536_v55  ;;  %v1065_v53 = vld [vmem:[#allocation7 + $0x7] sm:$0x1] }
  0xc3   : > { %v1561_v26 = vpop.eup %1560  ;;  %825 = vst [vmem:[%s2224_s26 + $0x360] sm:$0xff] %v1559_v30  ;;  %1572 = vpow2.f32 %v906_v21  ;;  %v914_v47 = vmul.f32 1.442695, %v890_v43  ;;  %v894_v39 = vmul.f32 %v2751_v62, %v877_v16  ;;  %v864_v31 = vsub.f32 %v2813_v61, %v2536_v55 }
  0xc4   : > { %v1563_v3 = vpop.eup %1562  ;;  %826 = vst [vmem:[%s2224_s26 + $0x3a0] sm:$0xff] %v1561_v26  ;;  %1574 = vpow2.f32 %v908_v29  ;;  %v916_v38 = vmul.f32 1.442695, %v891_v48  ;;  %v895_v45 = vmul.f32 %v2751_v62, %v878_v12  ;;  %v879_v44 = vmul.f32 %v863_v11, %v863_v11 }
  0xc5   : > { %v1565_v57 = vpop.eup %1564  ;;  %827 = vst [vmem:[%s2224_s26 + $0x3e0] sm:$0xff] %v1563_v3  ;;  %1576 = vpow2.f32 %v910_v1  ;;  %v918_v35 = vmul.f32 1.442695, %v892_v0  ;;  %v880_v2 = vmul.f32 %v864_v31, %v864_v31  ;;  %v920_v51 = vmul.f32 1.442695, %v893_v8 }
  0xc6   : > { %v1567_v10 = vpop.eup %1566  ;;  %930 = vst [vmem:[%s2224_s26 + $0x28] sm:$0xff] %v1565_v57  ;;  %1578 = vpow2.f32 %v912_v23  ;;  %v896_v55 = vmul.f32 %v2751_v62, %v879_v44  ;;  %v922_v28 = vmul.f32 1.442695, %v894_v39  ;;  %v949_v24 = vmul.f32 2.0, %v948_v27 }
  0xc7   : > { %v1569_v56 = vpop.eup %1568  ;;  %931 = vst [vmem:[%s2224_s26 + $0x68] sm:$0xff] %v1567_v10  ;;  %1580 = vpow2.f32 %v914_v47  ;;  %v897_v32 = vmul.f32 %v2751_v62, %v880_v2  ;;  %v924_v33 = vmul.f32 1.442695, %v895_v45  ;;  %v967_v21 = vsub.f32 %v2559_v54, %v2829_v14 }
  0xc8   : > { %v1571_v46 = vpop.eup %1570  ;;  %932 = vst [vmem:[%s2224_s26 + $0xa8] sm:$0xff] %v1569_v56  ;;  %1582 = vpow2.f32 %v916_v38  ;;  %v926_v37 = vmul.f32 1.442695, %v896_v55  ;;  %v950_v62 = vmul.f32 %v949_v24, %v948_v27  ;;  %v968_v43 = vsub.f32 %v2579_v63, %v2829_v14 }
  0xc9   : > { %v1573_v18 = vpop.eup %1572  ;;  %933 = vst [vmem:[%s2224_s26 + $0xe8] sm:$0xff] %v1571_v46  ;;  %1584 = vpow2.f32 %v918_v35  ;;  %v928_v22 = vmul.f32 1.442695, %v897_v32  ;;  %v1066_v19 = vmax.f32 %v1065_v53, 1e-08  ;;  %v969_v27 = vsub.f32 %v2586_v40, %v2829_v14 }
  0xca   : > { %v1575_v20 = vpop.eup %1574  ;;  %934 = vst [vmem:[%s2224_s26 + $0x128] sm:$0xff] %v1573_v18  ;;  %1586 = vpow2.f32 %v920_v51  ;;  %v960_v0 = vand.u32 2147483647, %v950_v62  ;;  %v2845_v12 = vmul.f32 %v967_v21, %v967_v21  ;;  %v2847_v30 = vmul.f32 %v968_v43, %v968_v43 }
  0xcb   : > { %v1577_v59 = vpop.eup %1576  ;;  %935 = vst [vmem:[%s2224_s26 + $0x168] sm:$0xff] %v1575_v20  ;;  %1588 = vpow2.f32 %v922_v28  ;;  %v1067_v49 = vmul.f32 2.0, %v1066_v19  ;;  %v962_v8 = vand.u32 2147483648, %v950_v62  ;;  %v970_v11 = vsub.f32 %v2600_v5, %v2829_v14  ;;  %v2873_v28 = vld [vmem:[#allocation5 + $0x7] ss:$0 sm:$0xff] }
  0xcc   : > { %v1579_v58 = vpop.eup %1578  ;;  %936 = vst [vmem:[%s2224_s26 + $0x1a8] sm:$0xff] %v1577_v59  ;;  %1590 = vpow2.f32 %v924_v33  ;;  %v971_v26 = vsub.f32 %v2626_v36, %v2829_v14  ;;  %vm956_vm8 = vweird.f32 %v950_v62  ;;  %v972_v31 = vsub.f32 %v2649_v4, %v2829_v14 }
  0xcd   : > { %v1581_v42 = vpop.eup %1580  ;;  %937 = vst [vmem:[%s2224_s26 + $0x1e8] sm:$0xff] %v1579_v58  ;;  %1592 = vpow2.f32 %v926_v37  ;;  %v2854_v47 = vmul.f32 %v1067_v49, %v1066_v19  ;;  %v973_v3 = vsub.f32 %v2664_v34, %v2829_v14  ;;  %v985_v38 = vmul.f32 %v969_v27, %v969_v27 }
  0xce   : > { %v1583_v15 = vpop.eup %1582  ;;  %938 = vst [vmem:[%s2224_s26 + $0x228] sm:$0xff] %v1581_v42  ;;  %1594 = vpow2.f32 %v928_v22  ;;  %v974_v45 = vsub.f32 %v2669_v60, %v2829_v14  ;;  %v975_v44 = vsub.f32 %v2719_v52, %v2829_v14  ;;  %v976_v57 = vsub.f32 %v2743_v41, %v2829_v14 }
  0xcf   : > { %v1585_v50 = vpop.eup %1584  ;;  %939 = vst [vmem:[%s2224_s26 + $0x268] sm:$0xff] %v1583_v15  ;;  %1596 = vrcp.f32 %v950_v62  ;;  %vm2866_vm10 = vcmp.eq.f32.partialorder %v960_v0, 8.507059e+37  ;;  %v963_v10 = vor.u32 1.1754944e-38, %v962_v8  ;;  %v986_v51 = vmul.f32 %v970_v11, %v970_v11 }
  0xd0   : > { %v1587_v13 = vpop.eup %1586  ;;  %940 = vst [vmem:[%s2224_s26 + $0x2a8] sm:$0xff] %v1585_v50  ;;  %1598 = vrcp.f32 %v2854_v47  ;;  %v987_v55 = vmul.f32 %v971_v26, %v971_v26  ;;  %v977_v56 = vsub.f32 %v2754_v6, %v2829_v14  ;;  %v988_v24 = vmul.f32 %v972_v31, %v972_v31 }
  0xd1   : > { %v1589_v16 = vpop.eup %1588  ;;  %941 = vst [vmem:[%s2224_s26 + $0x2e8] sm:$0xff] %v1587_v13  ;;  %v989_v46 = vmul.f32 %v973_v3, %v973_v3  ;;  %v978_v33 = vsub.f32 %v2760_v25, %v2829_v14  ;;  %v990_v37 = vmul.f32 %v974_v45, %v974_v45  ;;  %v991_v20 = vmul.f32 %v975_v44, %v975_v44 }
  0xd2   : > { %v1591_v29 = vpop.eup %1590  ;;  %942 = vst [vmem:[%s2224_s26 + $0x328] sm:$0xff] %v1589_v16  ;;  %v992_v22 = vmul.f32 %v976_v57, %v976_v57  ;;  %v979_v59 = vsub.f32 %v2765_v9, %v2829_v14  ;;  %v980_v42 = vsub.f32 %v2782_v7, %v2829_v14  ;;  %v981_v15 = vsub.f32 %v2806_v17, %v2829_v14 }
  0xd3   : > { %v1593_v48 = vpop.eup %1592  ;;  %943 = vst [vmem:[%s2224_s26 + $0x368] sm:$0xff] %v1591_v29  ;;  %v993_v53 = vmul.f32 %v977_v56, %v977_v56  ;;  %v1085_v50 = vsub.f32 %v2559_v54, %v2873_v28  ;;  %v1086_v13 = vsub.f32 %v2579_v63, %v2873_v28  ;;  %v1087_v21 = vsub.f32 %v2586_v40, %v2873_v28 }
  0xd4   : > { %v1595_v1 = vpop.eup %1594  ;;  %944 = vst [vmem:[%s2224_s26 + $0x3a8] sm:$0xff] %v1593_v48  ;;  %v994_v19 = vmul.f32 %v978_v33, %v978_v33  ;;  %v1088_v29 = vsub.f32 %v2600_v5, %v2873_v28  ;;  %v995_v48 = vmul.f32 %v979_v59, %v979_v59  ;;  %v1090_v63 = vsub.f32 %v2649_v4, %v2873_v28 }
  0xd5   : > { %v1597_v23 = vpop.eup %1596  ;;  %945 = vst [vmem:[%s2224_s26 + $0x3e8] sm:$0xff] %v1595_v1  ;;  %v1091_v40 = vsub.f32 %v2664_v34, %v2873_v28  ;;  %v996_v49 = vmul.f32 %v980_v42, %v980_v42  ;;  %v997_v1 = vmul.f32 %v981_v15, %v981_v15  ;;  %v2918_v8 = vmul.f32 %v1087_v21, %v1087_v21 }
  0xd6   : > { %v952_v39 = vmul.f32 %v1597_v23, %v950_v62  ;;  %vm957_vm9 = vweird.f32 %v1597_v23  ;;  %v982_v62 = vsub.f32 %v2813_v61, %v2829_v14  ;;  %v2896_v43 = vpop.eup %1598  ;;  %v1089_v14 = vsub.f32 %v2626_v36, %v2873_v28 }
  0xd7   : > { %vm2878_vm11 = vmor %vm956_vm8, %vm957_vm9  ;;  %v1070_v5 = vmul.f32 %v2896_v43, %v2854_v47  ;;  %v2916_v36 = vmul.f32 %v1086_v13, %v1086_v13  ;;  %vm1074_vm12 = vweird.f32 %v2854_v47  ;;  %v2921_v4 = vmul.f32 %v1088_v29, %v1088_v29 }
  0xd8   : > { %v953_v35 = vsub.f32 1.0, %v952_v39  ;;  %v2910_v0 = vmul.f32 %v982_v62, %v982_v62  ;;  %v2923_v34 = vmul.f32 %v1089_v14, %v1089_v14  ;;  %v1078_v26 = vand.u32 2147483647, %v2854_v47 }
  0xd9   : > { %v1080_v39 = vand.u32 2147483648, %v2854_v47  ;;  %v2927_v31 = vmul.f32 %v1090_v63, %v1090_v63  ;;  %v2929_v3 = vmul.f32 %v1091_v40, %v1091_v40  ;;  %v1071_v56 = vsub.f32 1.0, %v1070_v5 }
  0xda   : > { %v954_v32 = vmul.f32 %v1597_v23, %v953_v35  ;;  %vm2935_vm13 = vcmp.eq.f32.partialorder %v1078_v26, 8.507059e+37  ;;  %vm1075_vm14 = vweird.f32 %v2896_v43  ;;  %v1094_v21 = vsub.f32 %v2743_v41, %v2873_v28 }
  0xdb   : > { %vm2949_vm15 = vmor %vm1074_vm12, %vm1075_vm14  ;;  %v1095_v47 = vsub.f32 %v2754_v6, %v2873_v28  ;;  %v1096_v6 = vsub.f32 %v2760_v25, %v2873_v28 }
  0xdc   : > { %v955_v58 = vadd.f32 %v1597_v23, %v954_v32  ;;  %v1092_v32 = vsub.f32 %v2669_v60, %v2873_v28  ;;  %v1072_v60 = vmul.f32 %v2896_v43, %v1071_v56 }
  0xde   : > { %v959_v16 = vsel %vm2878_vm11, %v1597_v23, %v955_v58  ;;  %v2914_v23 = vmul.f32 %v1085_v50, %v1085_v50  ;;  %v1073_v41 = vadd.f32 %v2896_v43, %v1072_v60 }
  0xdf   : > { %v964_v54 = vsel %vm2866_vm10, %v963_v10, %v959_v16 }
  0xe0   : > { %v965_v27 = vmul.f32 -1.0, %v964_v54 }
  0xe2   : > { %v999_v11 = vperm.slane %v965_v27, 0  ;;  %v1077_v27 = vsel %vm2949_vm15, %v2896_v43, %v1073_v41 }
  0xe4   : > { %v1000_v45 = vmul.f32 %v999_v11, %v2845_v12  ;;  %v1001_v44 = vmul.f32 %v999_v11, %v2847_v30  ;;  %v1002_v57 = vmul.f32 %v999_v11, %v985_v38  ;;  %v1003_v35 = vmul.f32 %v999_v11, %v986_v51 }
  0xe5   : > { %v1004_v2 = vmul.f32 %v999_v11, %v987_v55  ;;  %v1005_v10 = vmul.f32 %v999_v11, %v988_v24  ;;  %v1006_v58 = vmul.f32 %v999_v11, %v989_v46  ;;  %v1007_v15 = vmul.f32 %v999_v11, %v990_v37 }
  0xe6   : > { %v1016_v33 = vmul.f32 1.442695, %v1000_v45  ;;  %v1018_v18 = vmul.f32 1.442695, %v1001_v44  ;;  %v1020_v59 = vmul.f32 1.442695, %v1002_v57  ;;  %v1008_v38 = vmul.f32 %v999_v11, %v991_v20 }
  0xe7   : > { %v1022_v42 = vmul.f32 1.442695, %v1003_v35  ;;  %v1081_v12 = vor.u32 1.1754944e-38, %v1080_v39  ;;  %v1024_v30 = vmul.f32 1.442695, %v1004_v2  ;;  %v1009_v55 = vmul.f32 %v999_v11, %v992_v22 }
  0xe8   : > { %1600 = vpow2.f32 %v1016_v33  ;;  %v1026_v51 = vmul.f32 1.442695, %v1005_v10  ;;  %v1028_v24 = vmul.f32 1.442695, %v1006_v58  ;;  %v1010_v46 = vmul.f32 %v999_v11, %v993_v53 }
  0xe9   : > { %1602 = vpow2.f32 %v1018_v18  ;;  %v1093_v37 = vsub.f32 %v2719_v52, %v2873_v28  ;;  %v1030_v50 = vmul.f32 1.442695, %v1007_v15  ;;  %v1011_v13 = vmul.f32 %v999_v11, %v994_v19 }
  0xea   : > { %1604 = vpow2.f32 %v1020_v59  ;;  %v1032_v20 = vmul.f32 1.442695, %v1008_v38  ;;  %v1012_v16 = vmul.f32 %v999_v11, %v995_v48  ;;  %v2953_v53 = vmul.f32 %v1092_v32, %v1092_v32 }
  0xeb   : > { %1606 = vpow2.f32 %v1022_v42  ;;  %v1034_v52 = vmul.f32 1.442695, %v1009_v55  ;;  %v1013_v19 = vmul.f32 %v999_v11, %v996_v49  ;;  %v1036_v14 = vmul.f32 1.442695, %v1010_v46 }
  0xec   : > { %1608 = vpow2.f32 %v1024_v30  ;;  %v1014_v54 = vmul.f32 %v999_v11, %v997_v1  ;;  %v1038_v63 = vmul.f32 1.442695, %v1011_v13  ;;  %v1015_v40 = vmul.f32 %v999_v11, %v2910_v0 }
  0xed   : > { %1610 = vpow2.f32 %v1026_v51  ;;  %v1040_v5 = vmul.f32 1.442695, %v1012_v16  ;;  %v1082_v1 = vsel %vm2935_vm13, %v1081_v12, %v1077_v27  ;;  %v1042_v39 = vmul.f32 1.442695, %v1013_v19 }
  0xee   : > { %v1601_v29 = vpop.eup %1600  ;;  %1612 = vpow2.f32 %v1028_v24  ;;  %v1083_v0 = vmul.f32 -1.0, %v1082_v1  ;;  %v1109_v11 = vmul.f32 %v1093_v37, %v1093_v37  ;;  %v1044_v43 = vmul.f32 1.442695, %v1014_v54 }
  0xef   : > { %v1603_v48 = vpop.eup %1602  ;;  %1048 = vst [vmem:[%s2224_s26 + $0x30] sm:$0xff] %v1601_v29  ;;  %1614 = vpow2.f32 %v1030_v50  ;;  %v1110_v44 = vmul.f32 %v1094_v21, %v1094_v21  ;;  %v1111_v57 = vmul.f32 %v1095_v47, %v1095_v47  ;;  %v1046_v2 = vmul.f32 1.442695, %v1015_v40 }
  0xf0   : > { %v1605_v49 = vpop.eup %1604  ;;  %1049 = vst [vmem:[%s2224_s26 + $0x70] sm:$0xff] %v1603_v48  ;;  %1616 = vpow2.f32 %v1032_v20  ;;  %v2971_v25 = vperm.slane %v1083_v0, 0  ;;  %v1097_v10 = vsub.f32 %v2765_v9, %v2873_v28  ;;  %v1112_v32 = vmul.f32 %v1096_v6, %v1096_v6 }
  0xf1   : > { %v1607_v26 = vpop.eup %1606  ;;  %1050 = vst [vmem:[%s2224_s26 + $0xb0] sm:$0xff] %v1605_v49  ;;  %1618 = vpow2.f32 %v1034_v52  ;;  %v1098_v33 = vsub.f32 %v2782_v7, %v2873_v28  ;;  %v1099_v18 = vsub.f32 %v2806_v17, %v2873_v28 }
  0xf2   : > { %v1609_v45 = vpop.eup %1608  ;;  %1051 = vst [vmem:[%s2224_s26 + $0xf0] sm:$0xff] %v1607_v26  ;;  %1620 = vpow2.f32 %v1036_v14  ;;  %v1118_v58 = vmul.f32 %v2971_v25, %v2914_v23  ;;  %v1119_v9 = vmul.f32 %v2971_v25, %v2916_v36  ;;  %v1120_v42 = vmul.f32 %v2971_v25, %v2918_v8 }
  0xf3   : > { %v1611_v35 = vpop.eup %1610  ;;  %1052 = vst [vmem:[%s2224_s26 + $0x130] sm:$0xff] %v1609_v45  ;;  %1622 = vpow2.f32 %v1038_v63  ;;  %v1121_v7 = vmul.f32 %v2971_v25, %v2921_v4  ;;  %v1122_v17 = vmul.f32 %v2971_v25, %v2923_v34  ;;  %v1123_v23 = vmul.f32 %v2971_v25, %v2927_v31 }
  0xf4   : > { %v1613_v56 = vpop.eup %1612  ;;  %1053 = vst [vmem:[%s2224_s26 + $0x170] sm:$0xff] %v1611_v35  ;;  %1624 = vpow2.f32 %v1040_v5  ;;  %v1134_v36 = vmul.f32 1.442695, %v1118_v58  ;;  %v1136_v12 = vmul.f32 1.442695, %v1119_v9  ;;  %v1124_v8 = vmul.f32 %v2971_v25, %v2929_v3 }
  0xf5   : > { %v1615_v59 = vpop.eup %1614  ;;  %1054 = vst [vmem:[%s2224_s26 + $0x1b0] sm:$0xff] %v1613_v56  ;;  %1626 = vpow2.f32 %v1042_v39  ;;  %v1138_v38 = vmul.f32 1.442695, %v1120_v42  ;;  %v1140_v4 = vmul.f32 1.442695, %v1121_v7  ;;  %v1125_v34 = vmul.f32 %v2971_v25, %v2953_v53 }
  0xf6   : > { %v1617_v15 = vpop.eup %1616  ;;  %1055 = vst [vmem:[%s2224_s26 + $0x1f0] sm:$0xff] %v1615_v59  ;;  %1628 = vpow2.f32 %v1044_v43  ;;  %v1100_v31 = vsub.f32 %v2813_v61, %v2873_v28  ;;  %v1142_v55 = vmul.f32 1.442695, %v1122_v17  ;;  %v1126_v60 = vmul.f32 %v2971_v25, %v1109_v11 }
  0xf7   : > { %v1619_v62 = vpop.eup %1618  ;;  %1056 = vst [vmem:[%s2224_s26 + $0x230] sm:$0xff] %v1617_v15  ;;  %1630 = vpow2.f32 %v1046_v2  ;;  %v1113_v24 = vmul.f32 %v1097_v10, %v1097_v10  ;;  %v1144_v46 = vmul.f32 1.442695, %v1123_v23  ;;  %v1127_v37 = vmul.f32 %v2971_v25, %v1110_v44 }
  0xf8   : > { %v1621_v30 = vpop.eup %1620  ;;  %1057 = vst [vmem:[%s2224_s26 + $0x270] sm:$0xff] %v1619_v62  ;;  %1632 = vpow2.f32 %v1134_v36  ;;  %v1114_v50 = vmul.f32 %v1098_v33, %v1098_v33  ;;  %v1146_v61 = vmul.f32 1.442695, %v1124_v8  ;;  %v1128_v28 = vmul.f32 %v2971_v25, %v1111_v57 }
  0xf9   : > { %v1623_v51 = vpop.eup %1622  ;;  %1058 = vst [vmem:[%s2224_s26 + $0x2b0] sm:$0xff] %v1621_v30  ;;  %1634 = vpow2.f32 %v1136_v12  ;;  %v1115_v21 = vmul.f32 %v1099_v18, %v1099_v18  ;;  %v1148_v16 = vmul.f32 1.442695, %v1125_v34  ;;  %v1129_v22 = vmul.f32 %v2971_v25, %v1112_v32 }
  0xfa   : > { %v1625_v3 = vpop.eup %1624  ;;  %1059 = vst [vmem:[%s2224_s26 + $0x2f0] sm:$0xff] %v1623_v51  ;;  %1636 = vpow2.f32 %v1138_v38  ;;  %v1116_v53 = vmul.f32 %v1100_v31, %v1100_v31  ;;  %v1150_v19 = vmul.f32 1.442695, %v1126_v60  ;;  %v1130_v41 = vmul.f32 %v2971_v25, %v1113_v24 }
  0xfb   : > { %v1627_v13 = vpop.eup %1626  ;;  %1060 = vst [vmem:[%s2224_s26 + $0x330] sm:$0xff] %v1625_v3  ;;  %1638 = vpow2.f32 %v1140_v4  ;;  %v1152_v29 = vmul.f32 1.442695, %v1127_v37  ;;  %v1131_v14 = vmul.f32 %v2971_v25, %v1114_v50  ;;  %v1154_v47 = vmul.f32 1.442695, %v1128_v28 }
  0xfc   : > { %v1629_v20 = vpop.eup %1628  ;;  %1061 = vst [vmem:[%s2224_s26 + $0x370] sm:$0xff] %v1627_v13  ;;  %1640 = vpow2.f32 %v1142_v55  ;;  %v1132_v48 = vmul.f32 %v2971_v25, %v1115_v21  ;;  %v1156_v40 = vmul.f32 1.442695, %v1129_v22  ;;  %v1133_v27 = vmul.f32 %v2971_v25, %v1116_v53 }
  0xfd   : > { %v1631_v52 = vpop.eup %1630  ;;  %1062 = vst [vmem:[%s2224_s26 + $0x3b0] sm:$0xff] %v1629_v20  ;;  %1642 = vpow2.f32 %v1144_v46  ;;  %v1158_v5 = vmul.f32 1.442695, %v1130_v41  ;;  %v1160_v6 = vmul.f32 1.442695, %v1131_v14 }
  0xfe   : > { %1063 = vst [vmem:[%s2224_s26 + $0x3f0] sm:$0xff] %v1631_v52  ;;  %v1633_v54 = vpop.eup %1632  ;;  %1644 = vpow2.f32 %v1146_v61  ;;  %v1162_v39 = vmul.f32 1.442695, %v1132_v48  ;;  %v1164_v11 = vmul.f32 1.442695, %v1133_v27 }
  0xff   : > { %v1635_v63 = vpop.eup %1634  ;;  %1166 = vst [vmem:[%s2224_s26 + $0x38] sm:$0xff] %v1633_v54  ;;  %1646 = vpow2.f32 %v1148_v16 }
 0x100   : > { %v1637_v49 = vpop.eup %1636  ;;  %1167 = vst [vmem:[%s2224_s26 + $0x78] sm:$0xff] %v1635_v63  ;;  %1648 = vpow2.f32 %v1150_v19 }
 0x101   : > { %v1639_v1 = vpop.eup %1638  ;;  %1168 = vst [vmem:[%s2224_s26 + $0xb8] sm:$0xff] %v1637_v49  ;;  %1650 = vpow2.f32 %v1152_v29 }
 0x102   : > { %v1641_v26 = vpop.eup %1640  ;;  %1169 = vst [vmem:[%s2224_s26 + $0xf8] sm:$0xff] %v1639_v1  ;;  %1652 = vpow2.f32 %v1154_v47 }
 0x103   : > { %v1643_v0 = vpop.eup %1642  ;;  %1170 = vst [vmem:[%s2224_s26 + $0x138] sm:$0xff] %v1641_v26  ;;  %1654 = vpow2.f32 %v1156_v40 }
 0x104   : > { %v1645_v45 = vpop.eup %1644  ;;  %1171 = vst [vmem:[%s2224_s26 + $0x178] sm:$0xff] %v1643_v0  ;;  %1656 = vpow2.f32 %v1158_v5 }
 0x105   : > { %v1647_v43 = vpop.eup %1646  ;;  %1172 = vst [vmem:[%s2224_s26 + $0x1b8] sm:$0xff] %v1645_v45  ;;  %1658 = vpow2.f32 %v1160_v6 }
 0x106   : > { %v1649_v44 = vpop.eup %1648  ;;  %1173 = vst [vmem:[%s2224_s26 + $0x1f8] sm:$0xff] %v1647_v43  ;;  %1660 = vpow2.f32 %v1162_v39 }
 0x107   : > { %v1651_v57 = vpop.eup %1650  ;;  %1174 = vst [vmem:[%s2224_s26 + $0x238] sm:$0xff] %v1649_v44  ;;  %1662 = vpow2.f32 %v1164_v11 }
 0x108   : > { %v1653_v35 = vpop.eup %1652  ;;  %1175 = vst [vmem:[%s2224_s26 + $0x278] sm:$0xff] %v1651_v57 }
 0x109   : > { %v1655_v2 = vpop.eup %1654  ;;  %1176 = vst [vmem:[%s2224_s26 + $0x2b8] sm:$0xff] %v1653_v35 }
 0x10a   : > { %v1657_v25 = vpop.eup %1656  ;;  %1177 = vst [vmem:[%s2224_s26 + $0x2f8] sm:$0xff] %v1655_v2 }
 0x10b   : > { %v1659_v10 = vpop.eup %1658  ;;  %1178 = vst [vmem:[%s2224_s26 + $0x338] sm:$0xff] %v1657_v25 }
 0x10c   : > { %v1661_v56 = vpop.eup %1660  ;;  %1179 = vst [vmem:[%s2224_s26 + $0x378] sm:$0xff] %v1659_v10 }
 0x10d   : > { %v1663_v32 = vpop.eup %1662  ;;  %1180 = vst [vmem:[%s2224_s26 + $0x3b8] sm:$0xff] %v1661_v56 }
 0x10e   : > { %1181 = vst [vmem:[%s2224_s26 + $0x3f8] sm:$0xff] %v1663_v32 }
 0x10f   : > { %1797 = shalt.err (!%p1794_p8)
}
 0x110   : > { %s1846_s27 = smov 1024   ;;  %s1847_s30 = smov 64  }
 0x111   : > { %1323 = dma.vmem_to_hbm [thread:$0]  (%p1920_p11), %s1197_s16, 16384, %s1199_s6, %s1183_s7, %s1846_s27, %s1846_s27, %s1847_s30  }
 0x112 PF: > { %s1213_s4 = sand.u32 1, %s1828_s12   ;;  %p3124_p9 = scmp.ge.s32.totalorder %s1840_s15, 2 }
 0x113   : > { %s1214_s23 = scalar_lea.sflag [#allocation4], %s1213_s4 }
 0x114   : > { %p1337_p10 = pnand %p3124_p9, %p1924_p12 }
 0x116   : > { %p1338_p1 = pneg %p1337_p10 }
 0x118   : > { %1823 = dma.done.wait (%p1338_p1), %s1214_s23, 16384  }
 0x119   : > { %1825 = vsyncadd (%p1338_p1), %s1214_s23, 4294950912  ;;  %p17_p2 = scmp.ge.s32.totalorder %s1893_s18, 4   ;;  %s3125_s12 = smov %s1832_s13 }
 0x11a   : > { %s3126_s13 = smov %s1836_s14  ;;  %s3127_s14 = smov %s1905_s21 }
 0x11b   : > { %s3128_s15 = smov %s1893_s18  ;;  %19 = sbr.rel (!%p17_p2) target bundleno = 6 (0x6), region = 85 }
 0x120   :  { %1220 = vsyncpa [#allocation3], 1 }
 0x121   :  { %1222 = vsyncpa [#allocation3 + $0x1], 1 }
 0x122   :  { %1223 = vsyncpa [#allocation6], 1 }
 0x123   :  { %1224 = vsyncpa [#allocation4], 1 }
 0x124   :  { %1226 = vsyncpa [#allocation4 + $0x1], 1 }

</bundles_post_ra>
